<compile_context>
chip_gen: v6e
topology: v6e:2x2x1
jax: 0.10.0
libtpu: 0.0.40
codegen_flags: <defaults>
</compile_context>

<pallas_src>
import jax
import jax.numpy as jnp
from jax import lax
from jax.experimental import pallas as pl
from jax.experimental.pallas import tpu as pltpu


def _round_up(n, m):
    return ((n + m - 1) // m) * m


def _pick_exp_dtype():
    """bf16 exp on v6e/v7x (EUP bf16 path); f32 everywhere else (safe default)."""
    try:
        kind = jax.devices()[0].device_kind.lower()
    except Exception:
        return jnp.float32
    if ("v6" in kind) or ("v7" in kind):
        return jnp.bfloat16
    return jnp.float32


def _num_tensorcores():
    """Best-effort TensorCore-per-chip count; 1 is the safe fallback."""
    try:
        info = pltpu.get_tpu_info()
        for attr in ("num_cores", "core_count", "cores_per_chip", "num_tensorcores"):
            n = getattr(info, attr, None)
            if isinstance(n, int) and n >= 1:
                return n
    except Exception:
        pass
    return 1


def _make_kernel(act_dtype, exp_dtype):
    """Build the fused 5-layer MLP kernel (activations transposed: (feat, tm))."""

    def elu(x_f32):
        # ELU(alpha=1).  exp runs on the EUP slot (bf16 path on v6e/v7x when
        # exp_dtype=bf16); compare/select stay f32 (the positive branch selects
        # away any exp overflow -- do NOT refactor into a mask-multiply form).
        # Single cast to the inter-layer activation dtype fused at the output.
        e = jnp.exp(x_f32.astype(exp_dtype)).astype(jnp.float32) - 1.0
        return jnp.where(x_f32 > 0, x_f32, e).astype(act_dtype)

    def dense(h, w_ref, b_ref):
        # h: (in, tm) act_dtype, w: (out, in) weight dtype (PyTorch layout),
        # f32 MXU accumulation, f32 bias add.
        return jnp.dot(w_ref[...], h, preferred_element_type=jnp.float32) + b_ref[...]

    def kernel(x_ref,
               w1_ref, b1_ref,
               w2_ref, b2_ref,
               w3_ref, b3_ref,
               w4_ref, b4_ref,
               w5_ref, b5_ref,
               o_ref):
        # x_ref: (tm, 8) batch-major block; cast once to the activation dtype.
        xb = x_ref[...].astype(act_dtype)
        # Layer 1: contract the 8-wide feature axis of both operands
        # (W1 (64,8) x x (tm,8)^T -> (64, tm)); no wrapper-side transpose.
        h = lax.dot_general(w1_ref[...], xb,
                            (((1,), (1,)), ((), ())),
                            preferred_element_type=jnp.float32) + b1_ref[...]
        h = elu(h)                                   # (64, tm)
        h = elu(dense(h, w2_ref, b2_ref))            # (128, tm)
        h = elu(dense(h, w3_ref, b3_ref))            # (64, tm)
        h = elu(dense(h, w4_ref, b4_ref))            # (32, tm)
        o_ref[...] = dense(h, w5_ref, b5_ref).astype(o_ref.dtype)   # (1, tm)

    return kernel


def rough_bergomi_net_forward(x, params, *, tm=2048,
                              weight_dtype=jnp.bfloat16,
                              act_dtype=jnp.bfloat16,
                              exp_dtype=None):
    """Forward pass of RoughBergomiNet.

    x      : (batch, 8) float array.
    params : list of 5 (W, b) pairs in PyTorch layout, W: (out, in), b: (out,).
    tm     : batch tile (sweep 2048/4096/8192; forced to a multiple of 128).
    Returns (batch, 1) float32.
    """
    batch, in_dim = x.shape
    assert in_dim == 8 and len(params) == 5
    if exp_dtype is None:
        exp_dtype = _pick_exp_dtype()

    # --- pick the batch tile -------------------------------------------------
    # tm must be a multiple of 128 so the (1, tm) output block is lane-dense.
    tm = max(128, (min(tm, _round_up(batch, 128)) // 128) * 128)
    # Only split a single-tile batch across cores when the chip actually has
    # multiple TensorCores (v7x); on single-TC chips it just doubles the
    # per-step fixed overhead.
    if (_num_tensorcores() >= 2 and _round_up(batch, tm) == tm
            and tm % 256 == 0 and batch > tm // 2):
        tm //= 2
    batch_p = _round_up(batch, tm)
    grid = (batch_p // tm,)

    # Weights stay in PyTorch (out, in) layout, cast to the MXU operand dtype;
    # biases become (out, 1) f32 columns (broadcast over lanes in-kernel).
    flat = []
    for (w, b) in params:
        flat.append(jnp.asarray(w, weight_dtype))
        flat.append(jnp.asarray(b, jnp.float32).reshape(-1, 1))

    def const_spec(a):
        # Full-array block, constant block index -> fetched once, VMEM-resident.
        return pl.BlockSpec(a.shape, lambda i: (0, 0))

    # x is consumed in its natural (batch, 8) layout; the last (partial) block
    # is boundary-padded by Pallas -- padded lanes never mix across the batch
    # axis and the corresponding outputs are sliced away below.
    in_specs = [pl.BlockSpec((tm, 8), lambda i: (i, 0))] + [const_spec(a) for a in flat]

    # Scoped-VMEM headroom only needed for very large tiles (v5e default 16 MiB).
    vmem_limit = (64 * 1024 * 1024) if tm >= 4096 else None

    out = pl.pallas_call(
        _make_kernel(act_dtype, exp_dtype),
        out_shape=jax.ShapeDtypeStruct((1, batch_p), jnp.float32),
        grid_spec=pltpu.PrefetchScalarGridSpec(
            num_scalar_prefetch=0,
            grid=grid,
            in_specs=in_specs,
            out_specs=pl.BlockSpec((1, tm), lambda i: (0, i)),
        ),
        compiler_params=pltpu.CompilerParams(
            dimension_semantics=("parallel",),
            vmem_limit_bytes=vmem_limit),
    )(x, *flat)

    # (1, batch_p) lane-dense slab -> (batch, 1) like the PyTorch module.
    return out.reshape(batch_p, 1)[:batch]


def init_params(key):
    """PyTorch nn.Linear default init: U(+/- 1/sqrt(fan_in)); W: (out, in), b: (out,)."""
    dims = [(8, 64), (64, 128), (128, 64), (64, 32), (32, 1)]
    params = []
    for fan_in, fan_out in dims:
        key, kw, kb = jax.random.split(key, 3)
        bound = 1.0 / (fan_in ** 0.5)
        w = jax.random.uniform(kw, (fan_out, fan_in), jnp.float32, -bound, bound)
        b = jax.random.uniform(kb, (fan_out,), jnp.float32, -bound, bound)
        params.append((w, b))
    return params


def reference_forward(x, params, *, weight_dtype=jnp.bfloat16,
                      act_dtype=jnp.bfloat16, exp_dtype=jnp.float32):
    """Pure-JAX reference with the same precision policy as the kernel.

    Note: bf16 weights/activations give ~1e-3 relative error vs a true f32
    PyTorch module; pass weight_dtype=act_dtype=jnp.float32 for f32 parity.
    """
    h = x.astype(act_dtype)
    for i, (w, b) in enumerate(params):
        wq = jnp.asarray(w, weight_dtype)
        z = jnp.dot(h, wq.T, preferred_element_type=jnp.float32) \
            + jnp.asarray(b, jnp.float32)[None, :]
        if i < len(params) - 1:
            e = jnp.exp(z.astype(exp_dtype)).astype(jnp.float32) - 1.0
            h = jnp.where(z > 0, z, e).astype(act_dtype)
        else:
            h = z
    return h


if __name__ == "__main__":
    key = jax.random.PRNGKey(0)
    key, kx = jax.random.split(key)

    batch = 200  # deliberately not a tile multiple: exercises boundary padding
    x = jax.random.normal(kx, (batch, 8), jnp.float32)
    params = init_params(key)
    exp_dtype = _pick_exp_dtype()

    ref = reference_forward(x, params, exp_dtype=exp_dtype)

    # Default tile (clipped down for this small batch -> single grid step).
    out = jax.block_until_ready(
        rough_bergomi_net_forward(x, params, exp_dtype=exp_dtype))
    assert out.shape == (batch, 1)
    max_diff = float(jnp.max(jnp.abs(out - ref)))
    assert jnp.allclose(out, ref, atol=5e-3, rtol=5e-3), f"mismatch (default tm): {max_diff}"

    # Small tile -> multiple grid steps + partial last x block.
    out2 = jax.block_until_ready(
        rough_bergomi_net_forward(x, params, tm=128, exp_dtype=exp_dtype))
    max_diff2 = float(jnp.max(jnp.abs(out2 - ref)))
    assert jnp.allclose(out2, ref, atol=5e-3, rtol=5e-3), f"mismatch (tm=128): {max_diff2}"

    print("KERNEL_OK")
</pallas_src>

<mosaic_0001>
module attributes {stable_mosaic.version = 11 : i64} {
  func.func @kernel(%arg0: i32, %arg1: memref<256x8xf32, #tpu.memory_space<vmem>>, %arg2: memref<64x8xbf16, #tpu.memory_space<vmem>>, %arg3: memref<64x1xf32, #tpu.memory_space<vmem>>, %arg4: memref<128x64xbf16, #tpu.memory_space<vmem>>, %arg5: memref<128x1xf32, #tpu.memory_space<vmem>>, %arg6: memref<64x128xbf16, #tpu.memory_space<vmem>>, %arg7: memref<64x1xf32, #tpu.memory_space<vmem>>, %arg8: memref<32x64xbf16, #tpu.memory_space<vmem>>, %arg9: memref<32x1xf32, #tpu.memory_space<vmem>>, %arg10: memref<1x32xbf16, #tpu.memory_space<vmem>>, %arg11: memref<1x1xf32, #tpu.memory_space<vmem>>, %arg12: memref<1x256xf32, #tpu.memory_space<vmem>>) attributes {dimension_semantics = [#tpu.dimension_semantics<parallel>], iteration_bounds = array<i64: 1>, scalar_prefetch = 0 : i64, scratch_operands = 0 : i64, tpu.core_type = #tpu.core_type<tc>, window_params = [{transform_indices = @transform_0, window_bounds = array<i64: 256, 8>}, {pipeline_mode = #tpu.pipeline_mode<synchronous>, transform_indices = @transform_1, window_bounds = array<i64: 64, 8>}, {pipeline_mode = #tpu.pipeline_mode<synchronous>, transform_indices = @transform_2, window_bounds = array<i64: 64, 1>}, {pipeline_mode = #tpu.pipeline_mode<synchronous>, transform_indices = @transform_3, window_bounds = array<i64: 128, 64>}, {pipeline_mode = #tpu.pipeline_mode<synchronous>, transform_indices = @transform_4, window_bounds = array<i64: 128, 1>}, {pipeline_mode = #tpu.pipeline_mode<synchronous>, transform_indices = @transform_5, window_bounds = array<i64: 64, 128>}, {pipeline_mode = #tpu.pipeline_mode<synchronous>, transform_indices = @transform_6, window_bounds = array<i64: 64, 1>}, {pipeline_mode = #tpu.pipeline_mode<synchronous>, transform_indices = @transform_7, window_bounds = array<i64: 32, 64>}, {pipeline_mode = #tpu.pipeline_mode<synchronous>, transform_indices = @transform_8, window_bounds = array<i64: 32, 1>}, {pipeline_mode = #tpu.pipeline_mode<synchronous>, transform_indices = @transform_9, window_bounds = array<i64: 1, 32>}, {pipeline_mode = #tpu.pipeline_mode<synchronous>, transform_indices = @transform_10, window_bounds = array<i64: 1, 1>}, {transform_indices = @transform_11, window_bounds = array<i64: 1, 256>}]} {
    %c0 = arith.constant 0 : index
    %c0_0 = arith.constant 0 : index
    %0 = vector.load %arg1[%c0, %c0_0] : memref<256x8xf32, #tpu.memory_space<vmem>>, vector<256x8xf32>
    %1 = arith.truncf %0 : vector<256x8xf32> to vector<256x8xbf16>
    %c0_1 = arith.constant 0 : index
    %c0_2 = arith.constant 0 : index
    %2 = vector.load %arg2[%c0_1, %c0_2] : memref<64x8xbf16, #tpu.memory_space<vmem>>, vector<64x8xbf16>
    %cst = arith.constant dense<0.000000e+00> : vector<64x256xf32>
    %3 = tpu.matmul %2, %1, %cst {dimension_numbers = #tpu.dot_dimension_numbers<[1], [1], [0], [0], [0, 0, 1, 0], [], []>} : vector<64x8xbf16>, vector<256x8xbf16>, vector<64x256xf32> -> vector<64x256xf32>
    %c0_3 = arith.constant 0 : index
    %c0_4 = arith.constant 0 : index
    %4 = vector.load %arg3[%c0_3, %c0_4] : memref<64x1xf32, #tpu.memory_space<vmem>>, vector<64x1xf32>
    %5 = vector.broadcast %4 : vector<64x1xf32> to vector<64x256xf32>
    %6 = arith.addf %3, %5 : vector<64x256xf32>
    %7 = math.exp %6 : vector<64x256xf32>
    %cst_5 = arith.constant 1.000000e+00 : f32
    %8 = vector.broadcast %cst_5 : f32 to vector<64x256xf32>
    %9 = arith.subf %7, %8 : vector<64x256xf32>
    %cst_6 = arith.constant 0.000000e+00 : f32
    %10 = vector.broadcast %cst_6 : f32 to vector<64x256xf32>
    %11 = arith.cmpf ogt, %6, %10 : vector<64x256xf32>
    %12 = arith.select %11, %6, %9 : vector<64x256xi1>, vector<64x256xf32>
    %13 = arith.truncf %12 : vector<64x256xf32> to vector<64x256xbf16>
    %c0_7 = arith.constant 0 : index
    %c0_8 = arith.constant 0 : index
    %14 = vector.load %arg4[%c0_7, %c0_8] : memref<128x64xbf16, #tpu.memory_space<vmem>>, vector<128x64xbf16>
    %cst_9 = arith.constant dense<0.000000e+00> : vector<128x256xf32>
    %15 = tpu.matmul %14, %13, %cst_9 {dimension_numbers = #tpu.dot_dimension_numbers<[1], [0], [0], [1], [0, 0, 1, 1], [], []>} : vector<128x64xbf16>, vector<64x256xbf16>, vector<128x256xf32> -> vector<128x256xf32>
    %c0_10 = arith.constant 0 : index
    %c0_11 = arith.constant 0 : index
    %16 = vector.load %arg5[%c0_10, %c0_11] : memref<128x1xf32, #tpu.memory_space<vmem>>, vector<128x1xf32>
    %17 = vector.broadcast %16 : vector<128x1xf32> to vector<128x256xf32>
    %18 = arith.addf %15, %17 : vector<128x256xf32>
    %19 = math.exp %18 : vector<128x256xf32>
    %cst_12 = arith.constant 1.000000e+00 : f32
    %20 = vector.broadcast %cst_12 : f32 to vector<128x256xf32>
    %21 = arith.subf %19, %20 : vector<128x256xf32>
    %cst_13 = arith.constant 0.000000e+00 : f32
    %22 = vector.broadcast %cst_13 : f32 to vector<128x256xf32>
    %23 = arith.cmpf ogt, %18, %22 : vector<128x256xf32>
    %24 = arith.select %23, %18, %21 : vector<128x256xi1>, vector<128x256xf32>
    %25 = arith.truncf %24 : vector<128x256xf32> to vector<128x256xbf16>
    %c0_14 = arith.constant 0 : index
    %c0_15 = arith.constant 0 : index
    %26 = vector.load %arg6[%c0_14, %c0_15] : memref<64x128xbf16, #tpu.memory_space<vmem>>, vector<64x128xbf16>
    %cst_16 = arith.constant dense<0.000000e+00> : vector<64x256xf32>
    %27 = tpu.matmul %26, %25, %cst_16 {dimension_numbers = #tpu.dot_dimension_numbers<[1], [0], [0], [1], [0, 0, 1, 1], [], []>} : vector<64x128xbf16>, vector<128x256xbf16>, vector<64x256xf32> -> vector<64x256xf32>
    %c0_17 = arith.constant 0 : index
    %c0_18 = arith.constant 0 : index
    %28 = vector.load %arg7[%c0_17, %c0_18] : memref<64x1xf32, #tpu.memory_space<vmem>>, vector<64x1xf32>
    %29 = vector.broadcast %28 : vector<64x1xf32> to vector<64x256xf32>
    %30 = arith.addf %27, %29 : vector<64x256xf32>
    %31 = math.exp %30 : vector<64x256xf32>
    %cst_19 = arith.constant 1.000000e+00 : f32
    %32 = vector.broadcast %cst_19 : f32 to vector<64x256xf32>
    %33 = arith.subf %31, %32 : vector<64x256xf32>
    %cst_20 = arith.constant 0.000000e+00 : f32
    %34 = vector.broadcast %cst_20 : f32 to vector<64x256xf32>
    %35 = arith.cmpf ogt, %30, %34 : vector<64x256xf32>
    %36 = arith.select %35, %30, %33 : vector<64x256xi1>, vector<64x256xf32>
    %37 = arith.truncf %36 : vector<64x256xf32> to vector<64x256xbf16>
    %c0_21 = arith.constant 0 : index
    %c0_22 = arith.constant 0 : index
    %38 = vector.load %arg8[%c0_21, %c0_22] : memref<32x64xbf16, #tpu.memory_space<vmem>>, vector<32x64xbf16>
    %cst_23 = arith.constant dense<0.000000e+00> : vector<32x256xf32>
    %39 = tpu.matmul %38, %37, %cst_23 {dimension_numbers = #tpu.dot_dimension_numbers<[1], [0], [0], [1], [0, 0, 1, 1], [], []>} : vector<32x64xbf16>, vector<64x256xbf16>, vector<32x256xf32> -> vector<32x256xf32>
    %c0_24 = arith.constant 0 : index
    %c0_25 = arith.constant 0 : index
    %40 = vector.load %arg9[%c0_24, %c0_25] : memref<32x1xf32, #tpu.memory_space<vmem>>, vector<32x1xf32>
    %41 = vector.broadcast %40 : vector<32x1xf32> to vector<32x256xf32>
    %42 = arith.addf %39, %41 : vector<32x256xf32>
    %43 = math.exp %42 : vector<32x256xf32>
    %cst_26 = arith.constant 1.000000e+00 : f32
    %44 = vector.broadcast %cst_26 : f32 to vector<32x256xf32>
    %45 = arith.subf %43, %44 : vector<32x256xf32>
    %cst_27 = arith.constant 0.000000e+00 : f32
    %46 = vector.broadcast %cst_27 : f32 to vector<32x256xf32>
    %47 = arith.cmpf ogt, %42, %46 : vector<32x256xf32>
    %48 = arith.select %47, %42, %45 : vector<32x256xi1>, vector<32x256xf32>
    %49 = arith.truncf %48 : vector<32x256xf32> to vector<32x256xbf16>
    %c0_28 = arith.constant 0 : index
    %c0_29 = arith.constant 0 : index
    %50 = vector.load %arg10[%c0_28, %c0_29] : memref<1x32xbf16, #tpu.memory_space<vmem>>, vector<1x32xbf16>
    %cst_30 = arith.constant dense<0.000000e+00> : vector<1x256xf32>
    %51 = tpu.matmul %50, %49, %cst_30 {dimension_numbers = #tpu.dot_dimension_numbers<[1], [0], [0], [1], [0, 0, 1, 1], [], []>} : vector<1x32xbf16>, vector<32x256xbf16>, vector<1x256xf32> -> vector<1x256xf32>
    %c0_31 = arith.constant 0 : index
    %c0_32 = arith.constant 0 : index
    %52 = vector.load %arg11[%c0_31, %c0_32] : memref<1x1xf32, #tpu.memory_space<vmem>>, vector<1x1xf32>
    %53 = vector.broadcast %52 : vector<1x1xf32> to vector<1x256xf32>
    %54 = arith.addf %51, %53 : vector<1x256xf32>
    %c0_33 = arith.constant 0 : index
    %c0_34 = arith.constant 0 : index
    %55 = vector.load %arg12[%c0_33, %c0_34] : memref<1x256xf32, #tpu.memory_space<vmem>>, vector<1x256xf32>
    tpu.vector_store %arg12[%c0_33, %c0_34], %54 {strides = array<i32>} : memref<1x256xf32, #tpu.memory_space<vmem>>, vector<1x256xf32>,
    return
  }
  func.func @transform_0(%arg0: i32) -> (i32, i32) {
    %c0_i32 = arith.constant 0 : i32
    %c0_i32_0 = arith.constant 0 : i32
    return %arg0, %c0_i32 : i32, i32
  }
  func.func @transform_1(%arg0: i32) -> (i32, i32) {
    %c0_i32 = arith.constant 0 : i32
    %c0_i32_0 = arith.constant 0 : i32
    %c0_i32_1 = arith.constant 0 : i32
    return %c0_i32, %c0_i32_0 : i32, i32
  }
  func.func @transform_2(%arg0: i32) -> (i32, i32) {
    %c0_i32 = arith.constant 0 : i32
    %c0_i32_0 = arith.constant 0 : i32
    %c0_i32_1 = arith.constant 0 : i32
    return %c0_i32, %c0_i32_0 : i32, i32
  }
  func.func @transform_3(%arg0: i32) -> (i32, i32) {
    %c0_i32 = arith.constant 0 : i32
    %c0_i32_0 = arith.constant 0 : i32
    %c0_i32_1 = arith.constant 0 : i32
    return %c0_i32, %c0_i32_0 : i32, i32
  }
  func.func @transform_4(%arg0: i32) -> (i32, i32) {
    %c0_i32 = arith.constant 0 : i32
    %c0_i32_0 = arith.constant 0 : i32
    %c0_i32_1 = arith.constant 0 : i32
    return %c0_i32, %c0_i32_0 : i32, i32
  }
  func.func @transform_5(%arg0: i32) -> (i32, i32) {
    %c0_i32 = arith.constant 0 : i32
    %c0_i32_0 = arith.constant 0 : i32
    %c0_i32_1 = arith.constant 0 : i32
    return %c0_i32, %c0_i32_0 : i32, i32
  }
  func.func @transform_6(%arg0: i32) -> (i32, i32) {
    %c0_i32 = arith.constant 0 : i32
    %c0_i32_0 = arith.constant 0 : i32
    %c0_i32_1 = arith.constant 0 : i32
    return %c0_i32, %c0_i32_0 : i32, i32
  }
  func.func @transform_7(%arg0: i32) -> (i32, i32) {
    %c0_i32 = arith.constant 0 : i32
    %c0_i32_0 = arith.constant 0 : i32
    %c0_i32_1 = arith.constant 0 : i32
    return %c0_i32, %c0_i32_0 : i32, i32
  }
  func.func @transform_8(%arg0: i32) -> (i32, i32) {
    %c0_i32 = arith.constant 0 : i32
    %c0_i32_0 = arith.constant 0 : i32
    %c0_i32_1 = arith.constant 0 : i32
    return %c0_i32, %c0_i32_0 : i32, i32
  }
  func.func @transform_9(%arg0: i32) -> (i32, i32) {
    %c0_i32 = arith.constant 0 : i32
    %c0_i32_0 = arith.constant 0 : i32
    %c0_i32_1 = arith.constant 0 : i32
    return %c0_i32, %c0_i32_0 : i32, i32
  }
  func.func @transform_10(%arg0: i32) -> (i32, i32) {
    %c0_i32 = arith.constant 0 : i32
    %c0_i32_0 = arith.constant 0 : i32
    %c0_i32_1 = arith.constant 0 : i32
    return %c0_i32, %c0_i32_0 : i32, i32
  }
  func.func @transform_11(%arg0: i32) -> (i32, i32) {
    %c0_i32 = arith.constant 0 : i32
    %c0_i32_0 = arith.constant 0 : i32
    return %c0_i32, %arg0 : i32, i32
  }
}

</mosaic_0001>

<bundles_post_ra>
// kernel: tpu_custom_call.1
= control target key start
LH: loop header
LB: loop body
LE: loop exit
PB: predicated region body
PF: predicated region fallthrough
CT: control target
= control target key end

     0   :  { %s2423_s0 = inlined_call_operand.vmem [shape: f32[200,8], index: 0, kind: input, shape index: {}]   ;;  %s2424_s1 = inlined_call_operand.vmem [shape: bf16[64,8], index: 1, kind: input, shape index: {}]   ;;  %s2425_s2 = inlined_call_operand.vmem [shape: f32[64,1], index: 2, kind: input, shape index: {}]   ;;  %s2426_s3 = inlined_call_operand.vmem [shape: bf16[128,64], index: 3, kind: input, shape index: {}]   ;;  %s2427_s4 = inlined_call_operand.vmem [shape: f32[128,1], index: 4, kind: input, shape index: {}]   ;;  %s2428_s5 = inlined_call_operand.vmem [shape: bf16[64,128], index: 5, kind: input, shape index: {}]   ;;  %s2429_s6 = inlined_call_operand.vmem [shape: f32[64,1], index: 6, kind: input, shape index: {}]   ;;  %s2430_s7 = inlined_call_operand.vmem [shape: bf16[32,64], index: 7, kind: input, shape index: {}]   ;;  %s2431_s8 = inlined_call_operand.vmem [shape: f32[32,1], index: 8, kind: input, shape index: {}]   ;;  %s2432_s9 = inlined_call_operand.vmem [shape: bf16[1,32], index: 9, kind: input, shape index: {}]   ;;  %s2433_s10 = inlined_call_operand.<no memory space> [shape: f32[1,1], index: 10, kind: input, shape index: {}]   ;;  %s2434_s11 = inlined_call_operand.hbm [shape: f32[1,256], index: 11, kind: output, shape index: {}]  }
   0x1   :  { %v16_v0 = vstv %s2433_s10 }
   0x2   :  { %17 = vst [vmem:[#allocation2] sm:$0x1] %v16_v0 }
   0x3   :  { %v72_v1 = vld [vmem:[%s2423_s0 + $0xf0] sm:$0xff]  ;;  %v73_v2 = vld [vmem:[%s2423_s0 + $0xf8] sm:$0xff]  ;;  %vm166_vm0 = vcmask 64512   ;;  %v70_v6 = vld [vmem:[%s2423_s0 + $0xe0] sm:$0xff]  ;;  %v1655_v8 = vmov 0  }
   0x4   :  { %v56_v3 = vld [vmem:[%s2423_s0 + $0x70] sm:$0xff]  ;;  %v89_v4 = vpack.c.bf16 %v73_v2, %v72_v1  ;;  %v57_v5 = vld [vmem:[%s2423_s0 + $0x78] sm:$0xff]  ;;  %v71_v7 = vld [vmem:[%s2423_s0 + $0xe8] sm:$0xff]  ;;  %1469 = vset.pattern.permute.xlu0 %v1655_v8  ;;  %1470 = vset.pattern.permute.xlu1 %v1655_v8 }
   0x5   :  { %v81_v9 = vpack.c.bf16 %v57_v5, %v56_v3  ;;  %v88_v10 = vpack.c.bf16 %v71_v7, %v70_v6  ;;  %597 = vmatprep.mubr.bf16.mxu1 %v1655_v8  ;;  %v54_v11 = vld [vmem:[%s2423_s0 + $0x60] sm:$0xff]  ;;  %v55_v12 = vld [vmem:[%s2423_s0 + $0x68] sm:$0xff]  ;;  %v68_v15 = vld [vmem:[%s2423_s0 + $0xd0] sm:$0xff] }
   0x6   :  { %1458 = vmatprep.subr.msk.bf16.mxu0 %vm166_vm0, %v89_v4  ;;  %v80_v14 = vpack.c.bf16 %v55_v12, %v54_v11  ;;  %v69_v16 = vld [vmem:[%s2423_s0 + $0xd8] sm:$0xff]  ;;  %v52_v19 = vld [vmem:[%s2423_s0 + $0x50] sm:$0xff]  ;;  %v1767_v21 = vld [vmem:[%s2424_s1] sm:$0xff]  }
   0x7   :  { %v201_v13 = vsel %vm166_vm0, %v81_v9, 0  ;;  %v87_v18 = vpack.c.bf16 %v69_v16, %v68_v15  ;;  %v53_v20 = vld [vmem:[%s2423_s0 + $0x58] sm:$0xff]  ;;  %1450 = vmatprep.mubr.msk.bf16.mxu0 %vm166_vm0, %v1767_v21  ;;  %v104_v22 = vld [vmem:[%s2425_s2 + $0x30] sm:$0xff]  ;;  %v66_v24 = vld [vmem:[%s2423_s0 + $0xc0] sm:$0xff] }
   0x8   :  { %1435 = vmatpush3.bf16.xpose.msra.mxu0 %v201_v13  ;;  %v198_v17 = vsel %vm166_vm0, %v80_v14, 0  ;;  %v79_v23 = vpack.c.bf16 %v53_v20, %v52_v19  ;;  %138 = vperm.xlu0 %1469, %v104_v22   ;;  %v67_v25 = vld [vmem:[%s2423_s0 + $0xc8] sm:$0xff]  ;;  %v105_v26 = vld [vmem:[%s2425_s2 + $0x38] sm:$0xff]  ;;  %v102_v27 = vld [vmem:[%s2425_s2 + $0x20] sm:$0xff] }
   0x9   :  { %1459 = vmatprep.subr.msk.bf16.mxu0 %vm166_vm0, %v88_v10  ;;  %128 = vperm.xlu1 %1470, %v102_v27   ;;  %v103_v28 = vld [vmem:[%s2425_s2 + $0x28] sm:$0xff]  ;;  %v86_v30 = vpack.c.bf16 %v67_v25, %v66_v24  ;;  %v50_v31 = vld [vmem:[%s2423_s0 + $0x40] sm:$0xff]  ;;  %v48_v33 = vld [vmem:[%s2423_s0 + $0x30] sm:$0xff] }
   0xa   :  { %v195_v29 = vsel %vm166_vm0, %v79_v23, 0  ;;  %v51_v32 = vld [vmem:[%s2423_s0 + $0x48] sm:$0xff]  ;;  %v49_v34 = vld [vmem:[%s2423_s0 + $0x38] sm:$0xff]  ;;  %v100_v35 = vld [vmem:[%s2425_s2 + $0x10] sm:$0xff] }
   0xb   :  { %v101_v36 = vld [vmem:[%s2425_s2 + $0x18] sm:$0xff]  ;;  %v78_v37 = vpack.c.bf16 %v51_v32, %v50_v31  ;;  %v77_v38 = vpack.c.bf16 %v49_v34, %v48_v33  ;;  %v64_v39 = vld [vmem:[%s2423_s0 + $0xb0] sm:$0xff]  ;;  %v98_v41 = vld [vmem:[%s2425_s2] sm:$0xff] }
   0xc   :  { %143 = vperm.xlu0 %1469, %v105_v26   ;;  %v65_v40 = vld [vmem:[%s2423_s0 + $0xb8] sm:$0xff]  ;;  %v99_v42 = vld [vmem:[%s2425_s2 + $0x8] sm:$0xff]  ;;  %v418_v46 = vld [vmem:[%s2427_s4 + $0x70] sm:$0xff] }
   0xd   :  { %133 = vperm.xlu1 %1470, %v103_v28   ;;  %v192_v43 = vsel %vm166_vm0, %v78_v37, 0  ;;  %v85_v44 = vpack.c.bf16 %v65_v40, %v64_v39  ;;  %v189_v45 = vsel %vm166_vm0, %v77_v38, 0  ;;  %v419_v47 = vld [vmem:[%s2427_s4 + $0x78] sm:$0xff]  ;;  %v62_v48 = vld [vmem:[%s2423_s0 + $0xa0] sm:$0xff]  ;;  %v63_v49 = vld [vmem:[%s2423_s0 + $0xa8] sm:$0xff] }
   0xe   :  { %v416_v50 = vld [vmem:[%s2427_s4 + $0x60] sm:$0xff]  ;;  %v417_v51 = vld [vmem:[%s2427_s4 + $0x68] sm:$0xff]  ;;  %v414_v54 = vld [vmem:[%s2427_s4 + $0x50] sm:$0xff]  ;;  %v84_v55 = vpack.c.bf16 %v63_v49, %v62_v48 }
   0xf   :  { %v46_v52 = vld [vmem:[%s2423_s0 + $0x20] sm:$0xff]  ;;  %v47_v53 = vld [vmem:[%s2423_s0 + $0x28] sm:$0xff] }
  0x10   :  { %1437 = vmatpush3.bf16.xpose.msra.mxu0 %v198_v17  ;;  %118 = vperm.xlu0 %1469, %v100_v35  }
  0x11   :  { %1460 = vmatprep.subr.msk.bf16.mxu0 %vm166_vm0, %v87_v18  ;;  %123 = vperm.xlu1 %1470, %v101_v36  }
  0x14   :  { %108 = vperm.xlu0 %1469, %v98_v41  }
  0x15   :  { %113 = vperm.xlu1 %1470, %v99_v42  }
  0x18   :  { %1439 = vmatpush3.bf16.xpose.msra.mxu0 %v195_v29  ;;  %492 = vperm.xlu0 %1469, %v418_v46  }
  0x19   :  { %1461 = vmatprep.subr.msk.bf16.mxu0 %vm166_vm0, %v86_v30  ;;  %497 = vperm.xlu1 %1470, %v419_v47  }
  0x1c   :  { %482 = vperm.xlu0 %1469, %v416_v50  }
  0x1d   :  { %487 = vperm.xlu1 %1470, %v417_v51  }
  0x20   :  { %1441 = vmatpush3.bf16.xpose.msra.mxu0 %v192_v43 }
  0x21   :  { %1462 = vmatprep.subr.msk.bf16.mxu0 %vm166_vm0, %v85_v44 }
  0x22   :  { %18 = vsyncpa [#allocation4], 0  ;;  %v415_v56 = vld [vmem:[%s2427_s4 + $0x58] sm:$0xff]  ;;  %v76_v57 = vpack.c.bf16 %v47_v53, %v46_v52  ;;  %472 = vperm.xlu0 %1469, %v414_v54   ;;  %v60_v58 = vld [vmem:[%s2423_s0 + $0x90] sm:$0xff] }
  0x23   :  { %v61_v59 = vld [vmem:[%s2423_s0 + $0x98] sm:$0xff]  ;;  %v412_v60 = vld [vmem:[%s2427_s4 + $0x40] sm:$0xff]  ;;  %477 = vperm.xlu1 %1470, %v415_v56   ;;  %v413_v61 = vld [vmem:[%s2427_s4 + $0x48] sm:$0xff] }
  0x24   :  { %v186_v62 = vsel %vm166_vm0, %v76_v57, 0  ;;  %v83_v63 = vpack.c.bf16 %v61_v59, %v60_v58  ;;  %v44_v0 = vld [vmem:[%s2423_s0 + $0x10] sm:$0xff]  ;;  %v45_v1 = vld [vmem:[%s2423_s0 + $0x18] sm:$0xff]  ;;  %v58_v5 = vld [vmem:[%s2423_s0 + $0x80] sm:$0xff] }
  0x25   :  { %v410_v2 = vld [vmem:[%s2427_s4 + $0x30] sm:$0xff]  ;;  %v411_v3 = vld [vmem:[%s2427_s4 + $0x38] sm:$0xff]  ;;  %v75_v4 = vpack.c.bf16 %v45_v1, %v44_v0  ;;  %v59_v6 = vld [vmem:[%s2423_s0 + $0x88] sm:$0xff] }
  0x26   :  { %462 = vperm.xlu0 %1469, %v412_v60   ;;  %v408_v7 = vld [vmem:[%s2427_s4 + $0x20] sm:$0xff]  ;;  %v409_v9 = vld [vmem:[%s2427_s4 + $0x28] sm:$0xff]  ;;  %v82_v11 = vpack.c.bf16 %v59_v6, %v58_v5  ;;  %v406_v14 = vld [vmem:[%s2427_s4 + $0x10] sm:$0xff] }
  0x27   :  { %467 = vperm.xlu1 %1470, %v413_v61   ;;  %v183_v10 = vsel %vm166_vm0, %v75_v4, 0  ;;  %v42_v12 = vld [vmem:[%s2423_s0] sm:$0xff]  ;;  %v43_v13 = vld [vmem:[%s2423_s0 + $0x8] sm:$0xff]  ;;  %v407_v15 = vld [vmem:[%s2427_s4 + $0x18] sm:$0xff] }
  0x28   :  { %1443 = vmatpush3.bf16.xpose.msra.mxu0 %v189_v45  ;;  %v74_v16 = vpack.c.bf16 %v43_v13, %v42_v12  ;;  %v404_v17 = vld [vmem:[%s2427_s4] sm:$0xff]  ;;  %v405_v18 = vld [vmem:[%s2427_s4 + $0x8] sm:$0xff]  ;;  %v868_v20 = vld [vmem:[%s2429_s6 + $0x30] sm:$0xff] }
  0x29   :  { %1463 = vmatprep.subr.msk.bf16.mxu0 %vm166_vm0, %v84_v55  ;;  %v869_v22 = vld [vmem:[%s2429_s6 + $0x38] sm:$0xff]  ;;  %v866_v23 = vld [vmem:[%s2429_s6 + $0x20] sm:$0xff]  ;;  %v1472_v24 = vld [vmem:[%s2424_s1 + $0x8] sm:$0xff]  }
  0x2a   :  { %452 = vperm.xlu0 %1469, %v410_v2   ;;  %v180_v19 = vsel %vm166_vm0, %v74_v16, 0  ;;  %v867_v25 = vld [vmem:[%s2429_s6 + $0x28] sm:$0xff]  ;;  %v864_v26 = vld [vmem:[%s2429_s6 + $0x10] sm:$0xff]  ;;  %v865_v27 = vld [vmem:[%s2429_s6 + $0x18] sm:$0xff] }
  0x2b   :  { %457 = vperm.xlu1 %1470, %v411_v3   ;;  %v862_v28 = vld [vmem:[%s2429_s6] sm:$0xff]  ;;  %v1473_v29 = vld [vmem:[%s2424_s1 + $0x10] sm:$0xff]   ;;  %v1102_v31 = vld [vmem:[%s2431_s8 + $0x18] sm:$0xff] }
  0x2c   :  { %v1101_v30 = vld [vmem:[%s2431_s8 + $0x10] sm:$0xff]  ;;  %v1099_v32 = vld [vmem:[%s2431_s8] sm:$0xff]  ;;  %v1474_v33 = vld [vmem:[%s2424_s1 + $0x18] sm:$0xff]  }
  0x2d   :  { %v1100_v34 = vld [vmem:[%s2431_s8 + $0x8] sm:$0xff]  ;;  %v1237_v35 = vld [vmem:[#allocation2] sm:$0x1]  ;;  %s1657_s8 = smov [#allocation3]  }
  0x2e   :  { %442 = vperm.xlu0 %1469, %v408_v7  }
  0x2f   :  { %447 = vperm.xlu1 %1470, %v409_v9  }
  0x30   :  { %1445 = vmatpush3.bf16.xpose.msra.mxu0 %v186_v62 }
  0x31   :  { %1464 = vmatprep.subr.msk.bf16.mxu0 %vm166_vm0, %v83_v63 }
  0x32   :  { %432 = vperm.xlu0 %1469, %v406_v14  }
  0x33   :  { %437 = vperm.xlu1 %1470, %v407_v15  }
  0x36   :  { %422 = vperm.xlu0 %1469, %v404_v17  }
  0x37   :  { %427 = vperm.xlu1 %1470, %v405_v18  }
  0x38   :  { %1447 = vmatpush3.bf16.xpose.msra.mxu0 %v183_v10 }
  0x39   :  { %1465 = vmatprep.subr.msk.bf16.mxu0 %vm166_vm0, %v82_v11 }
  0x3a   :  { %902 = vperm.xlu0 %1469, %v868_v20  }
  0x3b   :  { %907 = vperm.xlu1 %1470, %v869_v22  }
  0x3e   :  { %892 = vperm.xlu0 %1469, %v866_v23  }
  0x3f   :  { %897 = vperm.xlu1 %1470, %v867_v25  }
  0x40   :  { %1449 = vmatpush3.bf16.xpose.msra.mxu0 %v180_v19 }
  0x42   :  { %882 = vperm.xlu0 %1469, %v864_v26  }
  0x43   :  { %887 = vperm.xlu1 %1470, %v865_v27  }
  0x46   :  { %872 = vperm.xlu0 %1469, %v862_v28  }
  0x47   :  { %1451 = vmatmul.mubr.msk.bf16.vlgmr.msra.gmra.mxu0 %vm166_vm0, %v1767_v21  ;;  %v863_v21 = vld [vmem:[%s2429_s6 + $0x8] sm:$0xff] }
  0x48   :  { %1452 = vmatprep.mubr.msk.bf16.mxu0 %vm166_vm0, %v1472_v24  ;;  %877 = vperm.xlu1 %1470, %v863_v21  }
  0x4a   :  { %1115 = vperm.xlu0 %1469, %v1101_v30  }
  0x4c   :  { %1120 = vperm.xlu1 %1470, %v1102_v31  }
  0x4e   :  { %1105 = vperm.xlu0 %1469, %v1099_v32  }
  0x4f   :  { %1453 = vmatmul.mubr.msk.bf16.gmra.mxu0 %vm166_vm0, %v1472_v24 }
  0x50   :  { %1454 = vmatprep.mubr.msk.bf16.mxu0 %vm166_vm0, %v1473_v29  ;;  %1110 = vperm.xlu1 %1470, %v1100_v34  }
  0x52   :  { %1240 = vperm.xlu0 %1469, %v1237_v35  }
  0x57   :  { %1455 = vmatmul.mubr.msk.bf16.gmra.mxu0 %vm166_vm0, %v1473_v29 }
  0x58   :  { %1456 = vmatprep.mubr.msk.bf16.mxu0 %vm166_vm0, %v1474_v33 }
  0x5f   :  { %1457 = vmatmul.mubr.msk.bf16.gmra.mxu0 %vm166_vm0, %v1474_v33 }
  0x60   :  { %1171 = vmatprep.mubr.bf16.mxu0 %v1655_v8 }
  0x83   :  { %v139_v45 = vpop.permute.xlu0 %138 }
  0x84   :  { %v129_v40 = vpop.permute.xlu1 %128 }
  0x87   :  { %v144_v50 = vpop.permute.xlu0 %143 }
  0x88   :  { %v134_v44 = vpop.permute.xlu1 %133 }
  0x8b   :  { %v119_v59 = vpop.permute.xlu0 %118 }
  0x8c   :  { %v124_v49 = vpop.permute.xlu1 %123 }
  0x8f   :  { %v109_v15 = vpop.permute.xlu0 %108 }
  0x90   :  { %v114_v7 = vpop.permute.xlu1 %113 }
 0x107   :  { %v261_v36 = vpop.f32.mrf.mxu0 }
 0x108   :  { %v2005_v25 = vadd.f32 %v261_v36, %v109_v15 }
 0x109   :  { %v263_v37 = vpop.f32.mrf.mxu0 }
 0x10a   :  { %v1998_v18 = vadd.f32 %v263_v37, %v109_v15  ;;  %v300_v29 = vmul.f32 1.442695, %v2005_v25  ;;  %vm348_vm0 = vcmp.gt.f32.partialorder %v2005_v25, 0.0 }
 0x10b   :  { %v265_v38 = vpop.f32.mrf.mxu0 }
 0x10c   :  { %v2001_v22 = vadd.f32 %v265_v38, %v114_v7  ;;  %v302_v27 = vmul.f32 1.442695, %v1998_v18  ;;  %vm349_vm14 = vcmp.gt.f32.partialorder %v1998_v18, 0.0 }
 0x10d   :  { %v267_v39 = vpop.f32.mrf.mxu0 }
 0x10e   :  { %v1993_v12 = vadd.f32 %v267_v39, %v114_v7  ;;  %v304_v28 = vmul.f32 1.442695, %v2001_v22  ;;  %vm350_vm15 = vcmp.gt.f32.partialorder %v2001_v22, 0.0 }
 0x10f   :  { %v271_v41 = vpop.f32.mrf.mxu0 }
 0x110   :  { %v1995_v16 = vadd.f32 %v271_v41, %v119_v59  ;;  %v306_v24 = vmul.f32 1.442695, %v1993_v12  ;;  %vm351_vm12 = vcmp.gt.f32.partialorder %v1993_v12, 0.0 }
 0x111   :  { %v273_v42 = vpop.f32.mrf.mxu0 }
 0x112   :  { %v1987_v4 = vadd.f32 %v273_v42, %v119_v59  ;;  %v308_v26 = vmul.f32 1.442695, %v1995_v16  ;;  %vm352_vm13 = vcmp.gt.f32.partialorder %v1995_v16, 0.0 }
 0x113   :  { %v275_v43 = vpop.f32.mrf.mxu0 }
 0x114   :  { %v1990_v9 = vadd.f32 %v275_v43, %v124_v49  ;;  %v310_v19 = vmul.f32 1.442695, %v1987_v4  ;;  %vm353_vm10 = vcmp.gt.f32.partialorder %v1987_v4, 0.0 }
 0x115   :  { %v277_v46 = vpop.f32.mrf.mxu0 }
 0x116   :  { %v1969_v51 = vadd.f32 %v277_v46, %v124_v49  ;;  %v312_v23 = vmul.f32 1.442695, %v1990_v9  ;;  %vm354_vm11 = vcmp.gt.f32.partialorder %v1990_v9, 0.0 }
 0x117   :  { %v281_v47 = vpop.f32.mrf.mxu0 }
 0x118   :  { %v314_v56 = vmul.f32 1.442695, %v1969_v51  ;;  %v1984_v1 = vadd.f32 %v281_v47, %v129_v40  ;;  %vm355_vm8 = vcmp.gt.f32.partialorder %v1969_v51, 0.0 }
 0x119   :  { %v283_v48 = vpop.f32.mrf.mxu0 }
 0x11a   :  { %v1971_v53 = vadd.f32 %v283_v48, %v129_v40  ;;  %1489 = vpow2.f32 %v314_v56  ;;  %v316_v17 = vmul.f32 1.442695, %v1984_v1  ;;  %vm356_vm9 = vcmp.gt.f32.partialorder %v1984_v1, 0.0 }
 0x11b   :  { %v285_v52 = vpop.f32.mrf.mxu0 }
 0x11c   :  { %v318_v58 = vmul.f32 1.442695, %v1971_v53  ;;  %v1977_v60 = vadd.f32 %v285_v52, %v134_v44  ;;  %vm357_vm6 = vcmp.gt.f32.partialorder %v1971_v53, 0.0 }
 0x11d   :  { %v287_v54 = vpop.f32.mrf.mxu0 }
 0x11e   :  { %v1973_v55 = vadd.f32 %v287_v54, %v134_v44  ;;  %1491 = vpow2.f32 %v318_v58  ;;  %v320_v10 = vmul.f32 1.442695, %v1977_v60  ;;  %vm358_vm7 = vcmp.gt.f32.partialorder %v1977_v60, 0.0 }
 0x11f   :  { %v291_v57 = vpop.f32.mrf.mxu0 }
 0x120   :  { %v322_v61 = vmul.f32 1.442695, %v1973_v55  ;;  %v1980_v62 = vadd.f32 %v291_v57, %v139_v45  ;;  %vm359_vm1 = vcmp.gt.f32.partialorder %v1973_v55, 0.0 }
 0x121   :  { %v293_v63 = vpop.f32.mrf.mxu0 }
 0x122   :  { %v1982_v0 = vadd.f32 %v293_v63, %v139_v45  ;;  %v324_v2 = vmul.f32 1.442695, %v1980_v62  ;;  %1493 = vpow2.f32 %v322_v61  ;;  %vm360_vm2 = vcmp.gt.f32.partialorder %v1980_v62, 0.0 }
 0x123   :  { %v295_v3 = vpop.f32.mrf.mxu0 }
 0x124   :  { %v326_v5 = vmul.f32 1.442695, %v1982_v0  ;;  %v296_v6 = vadd.f32 %v295_v3, %v144_v50  ;;  %vm361_vm4 = vcmp.gt.f32.partialorder %v1982_v0, 0.0 }
 0x125   :  { %v297_v11 = vpop.f32.mrf.mxu0 }
 0x126   :  { %1495 = vpow2.f32 %v326_v5  ;;  %v328_v13 = vmul.f32 1.442695, %v296_v6  ;;  %v298_v14 = vadd.f32 %v297_v11, %v144_v50  ;;  %vm362_vm3 = vcmp.gt.f32.partialorder %v296_v6, 0.0 }
 0x127   :  { %1497 = vpow2.f32 %v324_v2  ;;  %v1490_v21 = vpop.eup %1489 }
 0x128   :  { %1499 = vpow2.f32 %v328_v13  ;;  %v330_v20 = vmul.f32 1.442695, %v298_v14  ;;  %vm363_vm5 = vcmp.gt.f32.partialorder %v298_v14, 0.0  ;;  %v1344_v48 = vadd.f32 -1.0, %v1490_v21  ;;  %v1482_v21 = vld [vmem:[%s2426_s3 + $0x38] sm:$0xff]  }
 0x129   :  { %1501 = vpow2.f32 %v320_v10 }
 0x12a   :  { %1503 = vpow2.f32 %v330_v20 }
 0x12b   :  { %1505 = vpow2.f32 %v316_v17  ;;  %v1492_v30 = vpop.eup %1491 }
 0x12c   :  { %1507 = vpow2.f32 %v310_v19  ;;  %v1346_v42 = vadd.f32 -1.0, %v1492_v30  ;;  %v2083_v30 = vpop.permute.xlu0 %492 }
 0x12d   :  { %1509 = vpow2.f32 %v312_v23 }
 0x12e   :  { %1511 = vpow2.f32 %v306_v24 }
 0x12f   :  { %1513 = vpow2.f32 %v308_v26  ;;  %v1494_v31 = vpop.eup %1493 }
 0x130   :  { %1515 = vpow2.f32 %v302_v27  ;;  %v1348_v36 = vadd.f32 -1.0, %v1494_v31  ;;  %v1475_v27 = vld [vmem:[%s2426_s3] sm:$0xff]   ;;  %v2085_v31 = vpop.permute.xlu1 %497 }
 0x131   :  { %1517 = vpow2.f32 %v304_v28  ;;  %v1480_v28 = vld [vmem:[%s2426_s3 + $0x28] sm:$0xff]  }
 0x132   :  { %1519 = vpow2.f32 %v300_v29  ;;  %v375_v52 = vsel %vm359_vm1, %v1973_v55, %v1348_v36  ;;  %vm540_vm1 = vcmask 523264   ;;  %v1481_v29 = vld [vmem:[%s2426_s3 + $0x30] sm:$0xff]  }
 0x133   :  { %v1496_v32 = vpop.eup %1495 }
 0x134   :  { %v1498_v33 = vpop.eup %1497  ;;  %v1350_v37 = vadd.f32 -1.0, %v1496_v32  ;;  %v2087_v32 = vpop.permute.xlu0 %482 }
 0x135   :  { %v1500_v34 = vpop.eup %1499  ;;  %v1349_v40 = vadd.f32 -1.0, %v1498_v33  ;;  %v2089_v33 = vpop.permute.xlu1 %487 }
 0x136   :  { %v1502_v35 = vpop.eup %1501  ;;  %v1351_v38 = vadd.f32 -1.0, %v1500_v34  ;;  %v377_v49 = vsel %vm361_vm4, %v1982_v0, %v1350_v37  ;;  %v373_v0 = vsel %vm357_vm6, %v1971_v53, %v1346_v42 }
 0x137   :  { %v1504_v39 = vpop.eup %1503  ;;  %v1347_v45 = vadd.f32 -1.0, %v1502_v35  ;;  %v376_v58 = vsel %vm360_vm2, %v1980_v62, %v1349_v40  ;;  %v385_v55 = vpack.c.bf16 %v375_v52, %v373_v0  ;;  %v371_v62 = vsel %vm355_vm8, %v1969_v51, %v1344_v48 }
 0x138   :  { %v1506_v41 = vpop.eup %1505  ;;  %v1352_v43 = vadd.f32 -1.0, %v1504_v39  ;;  %v378_v46 = vsel %vm362_vm3, %v296_v6, %v1351_v38  ;;  %v2091_v34 = vpop.permute.xlu0 %472 }
 0x139   :  { %v1508_v44 = vpop.eup %1507  ;;  %v1345_v56 = vadd.f32 -1.0, %v1506_v41  ;;  %v386_v63 = vpack.c.bf16 %v378_v46, %v376_v58  ;;  %v374_v5 = vsel %vm358_vm7, %v1977_v60, %v1347_v45  ;;  %v2093_v35 = vpop.permute.xlu1 %477 }
 0x13a   :  { %v1510_v47 = vpop.eup %1509  ;;  %v379_v50 = vsel %vm363_vm5, %v298_v14, %v1352_v43  ;;  %v1342_v61 = vadd.f32 -1.0, %v1508_v44 }
 0x13b   :  { %v1512_v54 = vpop.eup %1511  ;;  %v387_v57 = vpack.c.bf16 %v379_v50, %v377_v49  ;;  %v1343_v3 = vadd.f32 -1.0, %v1510_v47  ;;  %v372_v53 = vsel %vm356_vm9, %v1984_v1, %v1345_v56 }
 0x13c   :  { %v1514_v59 = vpop.eup %1513  ;;  %v1340_v7 = vadd.f32 -1.0, %v1512_v54  ;;  %v384_v14 = vpack.c.bf16 %v374_v5, %v372_v53  ;;  %v369_v60 = vsel %vm353_vm10, %v1987_v4, %v1342_v61  ;;  %v2095_v36 = vpop.permute.xlu0 %462 }
 0x13d   :  { %v1516_v2 = vpop.eup %1515  ;;  %573 = vmatprep.subr.bf16.mxu1 %v387_v57  ;;  %v1341_v10 = vadd.f32 -1.0, %v1514_v59  ;;  %v383_v17 = vpack.c.bf16 %v371_v62, %v369_v60  ;;  %v370_v19 = vsel %vm354_vm11, %v1990_v9, %v1343_v3  ;;  %v2097_v37 = vpop.permute.xlu1 %467 }
 0x13e   :  { %v1518_v6 = vpop.eup %1517  ;;  %574 = vmatpush1.bf16.msra.mxu1 %v386_v63  ;;  %v1338_v13 = vadd.f32 -1.0, %v1516_v2  ;;  %v367_v51 = vsel %vm351_vm12, %v1993_v12, %v1340_v7 }
 0x13f   :  { %575 = vmatprep.subr.bf16.mxu1 %v385_v55  ;;  %v1520_v11 = vpop.eup %1519  ;;  %v1339_v15 = vadd.f32 -1.0, %v1518_v6  ;;  %v368_v1 = vsel %vm352_vm13, %v1995_v16, %v1341_v10  ;;  %v1476_v16 = vld [vmem:[%s2426_s3 + $0x8] sm:$0xff]  }
 0x140   :  { %v1337_v20 = vadd.f32 -1.0, %v1520_v11  ;;  %v382_v4 = vpack.c.bf16 %v370_v19, %v368_v1  ;;  %v365_v23 = vsel %vm349_vm14, %v1998_v18, %v1338_v13  ;;  %v1477_v18 = vld [vmem:[%s2426_s3 + $0x10] sm:$0xff]   ;;  %v2099_v38 = vpop.permute.xlu0 %452 }
 0x141   :  { %v381_v24 = vpack.c.bf16 %v367_v51, %v365_v23  ;;  %v366_v26 = vsel %vm350_vm15, %v2001_v22, %v1339_v15  ;;  %v1478_v22 = vld [vmem:[%s2426_s3 + $0x18] sm:$0xff]   ;;  %v2101_v39 = vpop.permute.xlu1 %457 }
 0x142   :  { %576 = vmatpush1.bf16.msra.mxu1 %v384_v14  ;;  %v364_v9 = vsel %vm348_vm0, %v2005_v25, %v1337_v20  ;;  %v1479_v25 = vld [vmem:[%s2426_s3 + $0x20] sm:$0xff]  }
 0x143   :  { %577 = vmatprep.subr.bf16.mxu1 %v383_v17  ;;  %v380_v12 = vpack.c.bf16 %v366_v26, %v364_v9 }
 0x144   :  { %v2103_v40 = vpop.permute.xlu0 %442 }
 0x145   :  { %v2105_v41 = vpop.permute.xlu1 %447 }
 0x146   :  { %578 = vmatpush1.bf16.msra.mxu1 %v382_v4 }
 0x147   :  { %579 = vmatprep.subr.bf16.mxu1 %v381_v24 }
 0x148   :  { %v433_v42 = vpop.permute.xlu0 %432 }
 0x149   :  { %v438_v43 = vpop.permute.xlu1 %437 }
 0x14a   :  { %580 = vmatpush1.bf16.msra.mxu1 %v380_v12 }
 0x14c   :  { %v423_v44 = vpop.permute.xlu0 %422 }
 0x14d   :  { %1361 = vmatmul.mubr.msk.bf16.vlgmr.msra.gmra.mxu1 %vm540_vm1, %v1475_v27  ;;  %v428_v50 = vpop.permute.xlu1 %427 }
 0x14e   :  { %607 = vmatprep.mubr.bf16.mxu1 %v1655_v8 }
 0x155   :  { %1362 = vmatmul.mubr.msk.bf16.gmra.mxu1 %vm540_vm1, %v1476_v16 }
 0x156   :  { %617 = vmatprep.mubr.bf16.mxu1 %v1655_v8 }
 0x15d   :  { %1363 = vmatmul.mubr.msk.bf16.gmra.mxu1 %vm540_vm1, %v1477_v18 }
 0x15e   :  { %627 = vmatprep.mubr.bf16.mxu1 %v1655_v8 }
 0x165   :  { %1364 = vmatmul.mubr.msk.bf16.gmra.mxu1 %vm540_vm1, %v1478_v22 }
 0x166   :  { %637 = vmatprep.mubr.bf16.mxu1 %v1655_v8 }
 0x16d   :  { %1365 = vmatmul.mubr.msk.bf16.gmra.mxu1 %vm540_vm1, %v1479_v25 }
 0x16e   :  { %647 = vmatprep.mubr.bf16.mxu1 %v1655_v8 }
 0x175   :  { %1366 = vmatmul.mubr.msk.bf16.gmra.mxu1 %vm540_vm1, %v1480_v28 }
 0x176   :  { %657 = vmatprep.mubr.bf16.mxu1 %v1655_v8 }
 0x17d   :  { %1367 = vmatmul.mubr.msk.bf16.gmra.mxu1 %vm540_vm1, %v1481_v29 }
 0x17e   :  { %667 = vmatprep.mubr.bf16.mxu1 %v1655_v8 }
 0x185   :  { %1368 = vmatmul.mubr.msk.bf16.gmra.mxu1 %vm540_vm1, %v1482_v21 }
 0x186   :  { %966 = vmatprep.mubr.bf16.mxu1 %v1655_v8 }
 0x20d   :  { %v599_v45 = vpop.f32.mrf.mxu1 }
 0x20e   :  { %v600_v46 = vadd.f32 %v599_v45, %v423_v44 }
 0x20f   :  { %v601_v47 = vpop.f32.mrf.mxu1 }
 0x210   :  { %v678_v48 = vmul.f32 1.442695, %v600_v46  ;;  %v602_v49 = vadd.f32 %v601_v47, %v423_v44  ;;  %vm774_vm2 = vcmp.gt.f32.partialorder %v600_v46, 0.0 }
 0x211   :  { %v603_v52 = vpop.f32.mrf.mxu1 }
 0x212   :  { %1521 = vpow2.f32 %v678_v48  ;;  %v680_v54 = vmul.f32 1.442695, %v602_v49  ;;  %v604_v56 = vadd.f32 %v603_v52, %v428_v50  ;;  %vm775_vm4 = vcmp.gt.f32.partialorder %v602_v49, 0.0 }
 0x213   :  { %v605_v57 = vpop.f32.mrf.mxu1 }
 0x214   :  { %1523 = vpow2.f32 %v680_v54  ;;  %v682_v58 = vmul.f32 1.442695, %v604_v56  ;;  %v606_v59 = vadd.f32 %v605_v57, %v428_v50  ;;  %vm776_vm3 = vcmp.gt.f32.partialorder %v604_v56, 0.0 }
 0x215   :  { %v609_v61 = vpop.f32.mrf.mxu1 }
 0x216   :  { %1525 = vpow2.f32 %v682_v58  ;;  %v684_v63 = vmul.f32 1.442695, %v606_v59  ;;  %v610_v0 = vadd.f32 %v609_v61, %v433_v42  ;;  %vm777_vm5 = vcmp.gt.f32.partialorder %v606_v59, 0.0 }
 0x217   :  { %v611_v2 = vpop.f32.mrf.mxu1 }
 0x218   :  { %1527 = vpow2.f32 %v684_v63  ;;  %v686_v3 = vmul.f32 1.442695, %v610_v0  ;;  %v612_v55 = vadd.f32 %v611_v2, %v433_v42  ;;  %vm778_vm6 = vcmp.gt.f32.partialorder %v610_v0, 0.0 }
 0x219   :  { %v613_v5 = vpop.f32.mrf.mxu1 }
 0x21a   :  { %1529 = vpow2.f32 %v686_v3  ;;  %v688_v6 = vmul.f32 1.442695, %v612_v55  ;;  %v614_v7 = vadd.f32 %v613_v5, %v438_v43  ;;  %vm779_vm8 = vcmp.gt.f32.partialorder %v612_v55, 0.0 }
 0x21b   :  { %v615_v62 = vpop.f32.mrf.mxu1 }
 0x21c   :  { %1531 = vpow2.f32 %v688_v6  ;;  %v690_v10 = vmul.f32 1.442695, %v614_v7  ;;  %v616_v53 = vadd.f32 %v615_v62, %v438_v43  ;;  %vm780_vm7 = vcmp.gt.f32.partialorder %v614_v7, 0.0 }
 0x21d   :  { %v619_v11 = vpop.f32.mrf.mxu1 }
 0x21e   :  { %1533 = vpow2.f32 %v690_v10  ;;  %v692_v13 = vmul.f32 1.442695, %v616_v53  ;;  %vm781_vm9 = vcmp.gt.f32.partialorder %v616_v53, 0.0 }
 0x21f   :  { %v1522_v14 = vpop.eup %1521  ;;  %v621_v60 = vpop.f32.mrf.mxu1 }
 0x220   :  { %1535 = vpow2.f32 %v692_v13  ;;  %v1369_v19 = vadd.f32 -1.0, %v1522_v14  ;;  %v2147_v62 = vadd.f32 %v621_v60, %v2103_v40 }
 0x221   :  { %v1524_v15 = vpop.eup %1523  ;;  %v623_v17 = vpop.f32.mrf.mxu1 }
 0x222   :  { %v1370_v1 = vadd.f32 -1.0, %v1524_v15  ;;  %v2111_v26 = vsel %vm774_vm2, %v600_v46, %v1369_v19  ;;  %v2150_v10 = vadd.f32 %v623_v17, %v2105_v41  ;;  %v696_v19 = vmul.f32 1.442695, %v2147_v62 }
 0x223   :  { %v1526_v51 = vpop.eup %1525  ;;  %v2107_v20 = vpop.f32.mrf.mxu1 }
 0x224   :  { %v1371_v4 = vadd.f32 -1.0, %v1526_v51  ;;  %v2119_v22 = vsel %vm775_vm4, %v602_v49, %v1370_v1  ;;  %v698_v51 = vmul.f32 1.442695, %v2150_v10 }
 0x225   :  { %v1528_v23 = vpop.eup %1527  ;;  %v2109_v24 = vpop.f32.mrf.mxu1 }
 0x226   :  { %v2113_v9 = vsel %vm776_vm3, %v604_v56, %v1371_v4  ;;  %v1372_v12 = vadd.f32 -1.0, %v1528_v23 }
 0x227   :  { %v1530_v27 = vpop.eup %1529  ;;  %v838_v16 = vpack.c.bf16 %v2113_v9, %v2111_v26  ;;  %v2117_v18 = vpop.f32.mrf.mxu1  ;;  %v1486_v26 = vld [vmem:[%s2428_s5 + $0x18] sm:$0xff]  }
 0x228   :  { %v2121_v25 = vsel %vm777_vm5, %v606_v59, %v1372_v12  ;;  %v1373_v42 = vadd.f32 -1.0, %v1530_v27 }
 0x229   :  { %v1532_v28 = vpop.eup %1531  ;;  %v2123_v29 = vpop.f32.mrf.mxu1  ;;  %v839_v21 = vpack.c.bf16 %v2121_v25, %v2119_v22  ;;  %v1485_v22 = vld [vmem:[%s2428_s5 + $0x10] sm:$0xff]  }
 0x22a   :  { %v1374_v45 = vadd.f32 -1.0, %v1532_v28  ;;  %v2131_v49 = vsel %vm778_vm6, %v610_v0, %v1373_v42 }
 0x22b   :  { %v1534_v43 = vpop.eup %1533  ;;  %v2127_v44 = vpop.f32.mrf.mxu1 }
 0x22c   :  { %v1375_v46 = vadd.f32 -1.0, %v1534_v43  ;;  %v2137_v57 = vsel %vm779_vm8, %v612_v55, %v1374_v45 }
 0x22d   :  { %v1536_v47 = vpop.eup %1535  ;;  %v2129_v48 = vpop.f32.mrf.mxu1 }
 0x22e   :  { %v2133_v50 = vsel %vm780_vm7, %v614_v7, %v1375_v46  ;;  %v1376_v52 = vadd.f32 -1.0, %v1536_v47  ;;  %v2144_v7 = vadd.f32 %v619_v11, %v2103_v40 }
 0x22f   :  { %v840_v54 = vpack.c.bf16 %v2133_v50, %v2131_v49  ;;  %v641_v56 = vpop.f32.mrf.mxu1  ;;  %v1484_v49 = vld [vmem:[%s2428_s5 + $0x8] sm:$0xff]   ;;  %v908_v50 = vpop.permute.xlu1 %907 }
 0x230   :  { %v2139_v58 = vsel %vm781_vm9, %v616_v53, %v1376_v52  ;;  %v694_v14 = vmul.f32 1.442695, %v2144_v7 }
 0x231   :  { %v643_v59 = vpop.f32.mrf.mxu1  ;;  %v841_v61 = vpack.c.bf16 %v2139_v58, %v2137_v57 }
 0x232   :  { %1537 = vpow2.f32 %v694_v14  ;;  %v2208_v14 = vadd.f32 %v643_v59, %v2097_v37 }
 0x233   :  { %v645_v63 = vpop.f32.mrf.mxu1  ;;  %1539 = vpow2.f32 %v696_v19 }
 0x234   :  { %1541 = vpow2.f32 %v698_v51  ;;  %v714_v51 = vmul.f32 1.442695, %v2208_v14  ;;  %vm792_vm9 = vcmp.gt.f32.partialorder %v2208_v14, 0.0 }
 0x235   :  { %v649_v0 = vpop.f32.mrf.mxu1 }
 0x237   :  { %v651_v2 = vpop.f32.mrf.mxu1 }
 0x239   :  { %v653_v3 = vpop.f32.mrf.mxu1 }
 0x23a   :  { %v2186_v52 = vadd.f32 %v653_v3, %v2093_v35  ;;  %v2203_v3 = vadd.f32 %v641_v56, %v2095_v36  ;;  %v2218_v56 = vadd.f32 %v2129_v48, %v2095_v36  ;;  %v2237_v48 = vadd.f32 %v2107_v20, %v2105_v41 }
 0x23b   :  { %v655_v5 = vpop.f32.mrf.mxu1 }
 0x23c   :  { %v2153_v53 = vadd.f32 %v655_v5, %v2093_v35  ;;  %v2192_v5 = vadd.f32 %v645_v63, %v2097_v37  ;;  %v2223_v37 = vadd.f32 %v2117_v18, %v2099_v38  ;;  %v712_v59 = vmul.f32 1.442695, %v2203_v3 }
 0x23d   :  { %v659_v6 = vpop.f32.mrf.mxu1  ;;  %vm796_vm5 = vcmp.gt.f32.partialorder %v2186_v52, 0.0  ;;  %vm791_vm8 = vcmp.gt.f32.partialorder %v2203_v3, 0.0 }
 0x23e   :  { %v724_v60 = vmul.f32 1.442695, %v2153_v53  ;;  %v2177_v42 = vadd.f32 %v659_v6, %v2087_v32  ;;  %v2198_v6 = vadd.f32 %v649_v0, %v2091_v34  ;;  %v716_v0 = vmul.f32 1.442695, %v2192_v5 }
 0x23f   :  { %v661_v55 = vpop.f32.mrf.mxu1  ;;  %vm797_vm2 = vcmp.gt.f32.partialorder %v2153_v53, 0.0  ;;  %vm793_vm6 = vcmp.gt.f32.partialorder %v2192_v5, 0.0 }
 0x240   :  { %v2157_v15 = vadd.f32 %v661_v55, %v2087_v32  ;;  %1543 = vpow2.f32 %v724_v60  ;;  %v726_v55 = vmul.f32 1.442695, %v2177_v42  ;;  %v718_v19 = vmul.f32 1.442695, %v2198_v6 }
 0x241   :  { %v663_v13 = vpop.f32.mrf.mxu1  ;;  %vm798_vm3 = vcmp.gt.f32.partialorder %v2177_v42, 0.0  ;;  %vm794_vm7 = vcmp.gt.f32.partialorder %v2198_v6, 0.0 }
 0x242   :  { %v728_v1 = vmul.f32 1.442695, %v2157_v15  ;;  %v2167_v4 = vadd.f32 %v663_v13, %v2089_v33  ;;  %vm799_vm15 = vcmp.gt.f32.partialorder %v2157_v15, 0.0 }
 0x243   :  { %v665_v11 = vpop.f32.mrf.mxu1 }
 0x244   :  { %v2162_v40 = vadd.f32 %v665_v11, %v2089_v33  ;;  %v2181_v33 = vadd.f32 %v651_v2, %v2091_v34  ;;  %1545 = vpow2.f32 %v728_v1  ;;  %v730_v46 = vmul.f32 1.442695, %v2167_v4  ;;  %v2226_v11 = vpop.eup %1537 }
 0x245   :  { %v669_v17 = vpop.f32.mrf.mxu1  ;;  %v2213_v34 = vadd.f32 %v2127_v44, %v2101_v39  ;;  %v2230_v44 = vadd.f32 %v2123_v29, %v2101_v39  ;;  %v2233_v36 = vpop.eup %1539  ;;  %v710_v39 = vmul.f32 1.442695, %v2218_v56  ;;  %v704_v1 = vmul.f32 1.442695, %v2223_v37 }
 0x246   :  { %v732_v23 = vmul.f32 1.442695, %v2162_v40  ;;  %v2171_v12 = vadd.f32 %v669_v17, %v2083_v30  ;;  %v720_v13 = vmul.f32 1.442695, %v2181_v33  ;;  %v2240_v60 = vpop.eup %1541  ;;  %v2244_v17 = vadd.f32 %v2109_v24, %v2099_v38 }
 0x247   :  { %v671_v27 = vpop.f32.mrf.mxu1  ;;  %v708_v18 = vmul.f32 1.442695, %v2213_v34  ;;  %v706_v41 = vmul.f32 1.442695, %v2230_v44  ;;  %vm801_vm10 = vcmp.gt.f32.partialorder %v2162_v40, 0.0  ;;  %vm800_vm0 = vcmp.gt.f32.partialorder %v2167_v4, 0.0 }
 0x248   :  { %v2174_v28 = vadd.f32 %v671_v27, %v2083_v30  ;;  %v734_v43 = vmul.f32 1.442695, %v2171_v12  ;;  %1547 = vpow2.f32 %v732_v23  ;;  %v700_v27 = vmul.f32 1.442695, %v2237_v48 }
 0x249   :  { %v673_v45 = vpop.f32.mrf.mxu1  ;;  %vm802_vm11 = vcmp.gt.f32.partialorder %v2171_v12, 0.0  ;;  %vm795_vm4 = vcmp.gt.f32.partialorder %v2181_v33, 0.0 }
 0x24a   :  { %v736_v47 = vmul.f32 1.442695, %v2174_v28  ;;  %v2189_v30 = vadd.f32 %v673_v45, %v2085_v31  ;;  %v702_v45 = vmul.f32 1.442695, %v2244_v17  ;;  %vm803_vm13 = vcmp.gt.f32.partialorder %v2174_v28, 0.0 }
 0x24b   :  { %v675_v32 = vpop.f32.mrf.mxu1 }
 0x24c   :  { %1549 = vpow2.f32 %v736_v47  ;;  %v2195_v2 = vadd.f32 %v675_v32, %v2085_v31  ;;  %v738_v35 = vmul.f32 1.442695, %v2189_v30  ;;  %v722_v31 = vmul.f32 1.442695, %v2186_v52 }
 0x24d   :  { %1551 = vpow2.f32 %v734_v43  ;;  %v1544_v29 = vpop.eup %1543  ;;  %vm804_vm12 = vcmp.gt.f32.partialorder %v2189_v30, 0.0 }
 0x24e   :  { %1553 = vpow2.f32 %v730_v46  ;;  %v740_v63 = vmul.f32 1.442695, %v2195_v2  ;;  %vm805_vm14 = vcmp.gt.f32.partialorder %v2195_v2, 0.0 }
 0x24f   :  { %1555 = vpow2.f32 %v738_v35 }
 0x250   :  { %1557 = vpow2.f32 %v740_v63 }
 0x251   :  { %1559 = vpow2.f32 %v726_v55  ;;  %v1546_v23 = vpop.eup %1545 }
 0x252   :  { %1561 = vpow2.f32 %v720_v13 }
 0x253   :  { %1563 = vpow2.f32 %v722_v31  ;;  %v1394_v31 = vadd.f32 -1.0, %v1546_v23 }
 0x254   :  { %1565 = vpow2.f32 %v716_v0 }
 0x255   :  { %1567 = vpow2.f32 %v718_v19  ;;  %v1548_v20 = vpop.eup %1547 }
 0x256   :  { %1569 = vpow2.f32 %v712_v59  ;;  %v1396_v47 = vadd.f32 -1.0, %v1548_v20 }
 0x257   :  { %1571 = vpow2.f32 %v714_v51 }
 0x258   :  { %1573 = vpow2.f32 %v708_v18  ;;  %v833_v23 = vsel %vm801_vm10, %v2162_v40, %v1396_v47  ;;  %vm789_vm10 = vcmp.gt.f32.partialorder %v2213_v34, 0.0 }
 0x259   :  { %v1550_v43 = vpop.eup %1549  ;;  %1575 = vpow2.f32 %v710_v39  ;;  %v1392_v39 = vadd.f32 -1.0, %v1544_v29 }
 0x25a   :  { %v1552_v38 = vpop.eup %1551  ;;  %1577 = vpow2.f32 %v704_v1  ;;  %v1398_v32 = vadd.f32 -1.0, %v1550_v43 }
 0x25b   :  { %v1554_v24 = vpop.eup %1553  ;;  %1579 = vpow2.f32 %v706_v41  ;;  %v1397_v35 = vadd.f32 -1.0, %v1552_v38 }
 0x25c   :  { %v1556_v46 = vpop.eup %1555  ;;  %1581 = vpow2.f32 %v700_v27  ;;  %v1395_v59 = vadd.f32 -1.0, %v1554_v24  ;;  %v835_v1 = vsel %vm803_vm13, %v2174_v28, %v1398_v32  ;;  %vm788_vm13 = vcmp.gt.f32.partialorder %v2230_v44, 0.0 }
 0x25d   :  { %v1558_v55 = vpop.eup %1557  ;;  %1583 = vpow2.f32 %v702_v45  ;;  %v1399_v13 = vadd.f32 -1.0, %v1556_v46 }
 0x25e   :  { %v1560_v63 = vpop.eup %1559  ;;  %v1400_v0 = vadd.f32 -1.0, %v1558_v55  ;;  %v832_v40 = vsel %vm800_vm0, %v2167_v4, %v1395_v59  ;;  %vm783_vm0 = vcmp.gt.f32.partialorder %v2147_v62, 0.0 }
 0x25f   :  { %v1562_v19 = vpop.eup %1561  ;;  %v836_v51 = vsel %vm804_vm12, %v2189_v30, %v1399_v13  ;;  %v1393_v27 = vadd.f32 -1.0, %v1560_v63  ;;  %v834_v30 = vsel %vm802_vm11, %v2171_v12, %v1397_v35  ;;  %v829_v12 = vsel %vm797_vm2, %v2153_v53, %v1392_v39 }
 0x260   :  { %v1564_v18 = vpop.eup %1563  ;;  %v837_v41 = vsel %vm805_vm14, %v2195_v2, %v1400_v0  ;;  %v1390_v38 = vadd.f32 -1.0, %v1562_v19  ;;  %v852_v28 = vpack.c.bf16 %v836_v51, %v834_v30  ;;  %v831_v2 = vsel %vm799_vm15, %v2157_v15, %v1394_v31 }
 0x261   :  { %v1566_v20 = vpop.eup %1565  ;;  %v853_v43 = vpack.c.bf16 %v837_v41, %v835_v1  ;;  %v1391_v24 = vadd.f32 -1.0, %v1564_v18  ;;  %v851_v46 = vpack.c.bf16 %v833_v23, %v831_v2  ;;  %v830_v15 = vsel %vm798_vm3, %v2177_v42, %v1393_v27 }
 0x262   :  { %v1568_v45 = vpop.eup %1567  ;;  %v1388_v32 = vadd.f32 -1.0, %v1566_v20  ;;  %v850_v4 = vpack.c.bf16 %v832_v40, %v830_v15  ;;  %v827_v31 = vsel %vm795_vm4, %v2181_v33, %v1390_v38  ;;  %vm790_vm11 = vcmp.gt.f32.partialorder %v2218_v56, 0.0 }
 0x263   :  { %v1570_v29 = vpop.eup %1569  ;;  %934 = vmatprep.subr.bf16.mxu1 %v853_v43  ;;  %v1389_v35 = vadd.f32 -1.0, %v1568_v45  ;;  %v828_v53 = vsel %vm796_vm5, %v2186_v52, %v1391_v24  ;;  %v849_v59 = vpack.c.bf16 %v829_v12, %v827_v31  ;;  %vm787_vm12 = vcmp.gt.f32.partialorder %v2223_v37, 0.0 }
 0x264   :  { %v1572_v47 = vpop.eup %1571  ;;  %935 = vmatpush1.bf16.msra.mxu1 %v852_v28  ;;  %v1386_v63 = vadd.f32 -1.0, %v1570_v29  ;;  %v825_v42 = vsel %vm793_vm6, %v2192_v5, %v1388_v32  ;;  %v1379_v2 = vadd.f32 -1.0, %v2240_v60  ;;  %vm785_vm14 = vcmp.gt.f32.partialorder %v2237_v48, 0.0 }
 0x265   :  { %v1574_v55 = vpop.eup %1573  ;;  %936 = vmatprep.subr.bf16.mxu1 %v851_v46  ;;  %v1387_v19 = vadd.f32 -1.0, %v1572_v47  ;;  %v826_v33 = vsel %vm794_vm7, %v2198_v6, %v1389_v35  ;;  %vm786_vm15 = vcmp.gt.f32.partialorder %v2244_v17, 0.0  ;;  %v1377_v24 = vadd.f32 -1.0, %v2226_v11 }
 0x266   :  { %v1576_v13 = vpop.eup %1575  ;;  %v1384_v18 = vadd.f32 -1.0, %v1574_v55  ;;  %v848_v52 = vpack.c.bf16 %v828_v53, %v826_v33  ;;  %v823_v20 = vsel %vm791_vm8, %v2203_v3, %v1386_v63  ;;  %v1378_v3 = vadd.f32 -1.0, %v2233_v36 }
 0x267   :  { %v1578_v0 = vpop.eup %1577  ;;  %v1385_v1 = vadd.f32 -1.0, %v1576_v13  ;;  %v824_v30 = vsel %vm792_vm9, %v2208_v14, %v1387_v19  ;;  %v847_v5 = vpack.c.bf16 %v825_v42, %v823_v20  ;;  %vm784_vm2 = vcmp.gt.f32.partialorder %v2150_v10, 0.0 }
 0x268   :  { %v1580_v51 = vpop.eup %1579  ;;  %937 = vmatpush1.bf16.msra.mxu1 %v850_v4  ;;  %v1382_v23 = vadd.f32 -1.0, %v1578_v0  ;;  %v821_v6 = vsel %vm789_vm10, %v2213_v34, %v1384_v18  ;;  %v815_v60 = vsel %vm783_vm0, %v2147_v62, %v1378_v3  ;;  %vm782_vm3 = vcmp.gt.f32.partialorder %v2144_v7, 0.0  ;;  %v1483_v62 = vld [vmem:[%s2428_s5] sm:$0xff]  }
 0x269   :  { %v1582_v39 = vpop.eup %1581  ;;  %938 = vmatprep.subr.bf16.mxu1 %v849_v59  ;;  %v1383_v27 = vadd.f32 -1.0, %v1580_v51  ;;  %v822_v38 = vsel %vm790_vm11, %v2218_v56, %v1385_v1 }
 0x26a   :  { %v1584_v41 = vpop.eup %1583  ;;  %v1380_v43 = vadd.f32 -1.0, %v1582_v39  ;;  %v846_v28 = vpack.c.bf16 %v824_v30, %v822_v38  ;;  %v819_v14 = vsel %vm787_vm12, %v2223_v37, %v1382_v23 }
 0x26b   :  { %v1381_v45 = vadd.f32 -1.0, %v1584_v41  ;;  %v820_v29 = vsel %vm788_vm13, %v2230_v44, %v1383_v27  ;;  %v845_v34 = vpack.c.bf16 %v821_v6, %v819_v14  ;;  %v816_v44 = vsel %vm784_vm2, %v2150_v10, %v1379_v2 }
 0x26c   :  { %939 = vmatpush1.bf16.msra.mxu1 %v848_v52  ;;  %v817_v56 = vsel %vm785_vm14, %v2237_v48, %v1380_v43  ;;  %v814_v48 = vsel %vm782_vm3, %v2144_v7, %v1377_v24  ;;  %v903_v7 = vpop.permute.xlu0 %902 }
 0x26d   :  { %940 = vmatprep.subr.bf16.mxu1 %v847_v5  ;;  %v818_v36 = vsel %vm786_vm15, %v2244_v17, %v1381_v45  ;;  %v843_v40 = vpack.c.bf16 %v817_v56, %v815_v60  ;;  %v842_v11 = vpack.c.bf16 %v816_v44, %v814_v48 }
 0x26e   :  { %v844_v37 = vpack.c.bf16 %v820_v29, %v818_v36 }
 0x270   :  { %941 = vmatpush1.bf16.msra.mxu1 %v846_v28  ;;  %v893_v32 = vpop.permute.xlu0 %892 }
 0x271   :  { %942 = vmatprep.subr.bf16.mxu1 %v845_v34 }
 0x274   :  { %943 = vmatpush1.bf16.msra.mxu1 %v844_v37  ;;  %v883_v19 = vpop.permute.xlu0 %882 }
 0x275   :  { %944 = vmatprep.subr.bf16.mxu1 %v843_v40 }
 0x278   :  { %945 = vmatpush1.bf16.msra.mxu1 %v842_v11  ;;  %v873_v6 = vpop.permute.xlu0 %872 }
 0x279   :  { %946 = vmatprep.subr.bf16.mxu1 %v841_v61  ;;  %v898_v61 = vpop.permute.xlu1 %897 }
 0x27c   :  { %947 = vmatpush1.bf16.msra.mxu1 %v840_v54 }
 0x27d   :  { %948 = vmatprep.subr.bf16.mxu1 %v839_v21  ;;  %v888_v47 = vpop.permute.xlu1 %887 }
 0x280   :  { %949 = vmatpush1.bf16.msra.mxu1 %v838_v16 }
 0x281   :  { %v878_v52 = vpop.permute.xlu1 %877 }
 0x283   :  { %967 = vmatmul.mubr.bf16.vlgmr.msra.gmra.mxu1 %v1483_v62 }
 0x284   :  { %976 = vmatprep.mubr.bf16.mxu1 %v1655_v8 }
 0x28b   :  { %977 = vmatmul.mubr.bf16.gmra.mxu1 %v1484_v49 }
 0x28c   :  { %986 = vmatprep.mubr.bf16.mxu1 %v1655_v8 }
 0x293   :  { %987 = vmatmul.mubr.bf16.gmra.mxu1 %v1485_v22 }
 0x294   :  { %996 = vmatprep.mubr.bf16.mxu1 %v1655_v8 }
 0x29b   :  { %997 = vmatmul.mubr.bf16.gmra.mxu1 %v1486_v26 }
 0x343   :  { %v968_v9 = vpop.f32.mrf.mxu1 }
 0x344   :  { %v2369_v24 = vadd.f32 %v968_v9, %v873_v6 }
 0x345   :  { %v970_v16 = vpop.f32.mrf.mxu1 }
 0x346   :  { %v2362_v28 = vadd.f32 %v970_v16, %v873_v6  ;;  %v1007_v44 = vmul.f32 1.442695, %v2369_v24 }
 0x347   :  { %v972_v25 = vpop.f32.mrf.mxu1 }
 0x348   :  { %v2365_v29 = vadd.f32 %v972_v25, %v878_v52  ;;  %v1009_v37 = vmul.f32 1.442695, %v2362_v28  ;;  %vm1056_vm2 = vcmp.gt.f32.partialorder %v2362_v28, 0.0 }
 0x349   :  { %v974_v21 = vpop.f32.mrf.mxu1 }
 0x34a   :  { %v2357_v5 = vadd.f32 %v974_v21, %v878_v52  ;;  %v1011_v60 = vmul.f32 1.442695, %v2365_v29  ;;  %vm1057_vm3 = vcmp.gt.f32.partialorder %v2365_v29, 0.0 }
 0x34b   :  { %v978_v54 = vpop.f32.mrf.mxu1 }
 0x34c   :  { %v2359_v45 = vadd.f32 %v978_v54, %v883_v19  ;;  %v1013_v56 = vmul.f32 1.442695, %v2357_v5  ;;  %vm1058_vm15 = vcmp.gt.f32.partialorder %v2357_v5, 0.0 }
 0x34d   :  { %v980_v57 = vpop.f32.mrf.mxu1 }
 0x34e   :  { %v2351_v33 = vadd.f32 %v980_v57, %v883_v19  ;;  %v1015_v36 = vmul.f32 1.442695, %v2359_v45  ;;  %vm1059_vm0 = vcmp.gt.f32.partialorder %v2359_v45, 0.0 }
 0x34f   :  { %v982_v58 = vpop.f32.mrf.mxu1 }
 0x350   :  { %v2355_v20 = vadd.f32 %v982_v58, %v888_v47  ;;  %v1017_v14 = vmul.f32 1.442695, %v2351_v33  ;;  %vm1060_vm13 = vcmp.gt.f32.partialorder %v2351_v33, 0.0 }
 0x351   :  { %v984_v10 = vpop.f32.mrf.mxu1 }
 0x352   :  { %v2333_v12 = vadd.f32 %v984_v10, %v888_v47  ;;  %v1019_v34 = vmul.f32 1.442695, %v2355_v20  ;;  %vm1061_vm14 = vcmp.gt.f32.partialorder %v2355_v20, 0.0 }
 0x353   :  { %v988_v17 = vpop.f32.mrf.mxu1 }
 0x354   :  { %v1021_v63 = vmul.f32 1.442695, %v2333_v12  ;;  %v2348_v42 = vadd.f32 %v988_v17, %v893_v32  ;;  %vm1062_vm11 = vcmp.gt.f32.partialorder %v2333_v12, 0.0 }
 0x355   :  { %v990_v46 = vpop.f32.mrf.mxu1 }
 0x356   :  { %v2335_v35 = vadd.f32 %v990_v46, %v893_v32  ;;  %1585 = vpow2.f32 %v1021_v63  ;;  %v1023_v38 = vmul.f32 1.442695, %v2348_v42  ;;  %vm1063_vm12 = vcmp.gt.f32.partialorder %v2348_v42, 0.0 }
 0x357   :  { %v992_v55 = vpop.f32.mrf.mxu1 }
 0x358   :  { %v1025_v31 = vmul.f32 1.442695, %v2335_v35  ;;  %v2341_v0 = vadd.f32 %v992_v55, %v898_v61  ;;  %vm1064_vm9 = vcmp.gt.f32.partialorder %v2335_v35, 0.0 }
 0x359   :  { %v994_v15 = vpop.f32.mrf.mxu1 }
 0x35a   :  { %v2337_v13 = vadd.f32 %v994_v15, %v898_v61  ;;  %1587 = vpow2.f32 %v1025_v31  ;;  %v1027_v41 = vmul.f32 1.442695, %v2341_v0  ;;  %vm1065_vm10 = vcmp.gt.f32.partialorder %v2341_v0, 0.0 }
 0x35b   :  { %v998_v4 = vpop.f32.mrf.mxu1 }
 0x35c   :  { %v1029_v53 = vmul.f32 1.442695, %v2337_v13  ;;  %v2344_v59 = vadd.f32 %v998_v4, %v903_v7  ;;  %vm1066_vm4 = vcmp.gt.f32.partialorder %v2337_v13, 0.0 }
 0x35d   :  { %v1000_v51 = vpop.f32.mrf.mxu1 }
 0x35e   :  { %v2346_v18 = vadd.f32 %v1000_v51, %v903_v7  ;;  %v1031_v39 = vmul.f32 1.442695, %v2344_v59  ;;  %1589 = vpow2.f32 %v1029_v53  ;;  %vm1067_vm5 = vcmp.gt.f32.partialorder %v2344_v59, 0.0 }
 0x35f   :  { %v1002_v1 = vpop.f32.mrf.mxu1 }
 0x360   :  { %v1033_v23 = vmul.f32 1.442695, %v2346_v18  ;;  %v1003_v27 = vadd.f32 %v1002_v1, %v908_v50  ;;  %vm1068_vm7 = vcmp.gt.f32.partialorder %v2346_v18, 0.0 }
 0x361   :  { %v1004_v30 = vpop.f32.mrf.mxu1 }
 0x362   :  { %1591 = vpow2.f32 %v1033_v23  ;;  %v1005_v43 = vadd.f32 %v1004_v30, %v908_v50  ;;  %v1035_v3 = vmul.f32 1.442695, %v1003_v27  ;;  %vm1069_vm6 = vcmp.gt.f32.partialorder %v1003_v27, 0.0 }
 0x363   :  { %1593 = vpow2.f32 %v1031_v39  ;;  %v1586_v40 = vpop.eup %1585 }
 0x364   :  { %1595 = vpow2.f32 %v1027_v41  ;;  %v1037_v2 = vmul.f32 1.442695, %v1005_v43  ;;  %vm1070_vm8 = vcmp.gt.f32.partialorder %v1005_v43, 0.0  ;;  %v1412_v46 = vadd.f32 -1.0, %v1586_v40 }
 0x365   :  { %1597 = vpow2.f32 %v1035_v3 }
 0x366   :  { %1599 = vpow2.f32 %v1037_v2 }
 0x367   :  { %1601 = vpow2.f32 %v1023_v38  ;;  %v1588_v48 = vpop.eup %1587 }
 0x368   :  { %1603 = vpow2.f32 %v1017_v14  ;;  %v1414_v57 = vadd.f32 -1.0, %v1588_v48 }
 0x369   :  { %1605 = vpow2.f32 %v1019_v34 }
 0x36a   :  { %1607 = vpow2.f32 %v1013_v56 }
 0x36b   :  { %1609 = vpow2.f32 %v1015_v36  ;;  %v1590_v11 = vpop.eup %1589 }
 0x36c   :  { %1611 = vpow2.f32 %v1009_v37  ;;  %v1416_v9 = vadd.f32 -1.0, %v1590_v11 }
 0x36d   :  { %1613 = vpow2.f32 %v1011_v60 }
 0x36e   :  { %1615 = vpow2.f32 %v1007_v44  ;;  %v1082_v55 = vsel %vm1066_vm4, %v2337_v13, %v1416_v9  ;;  %vm1055_vm4 = vcmp.gt.f32.partialorder %v2369_v24, 0.0 }
 0x36f   :  { %v1592_v62 = vpop.eup %1591 }
 0x370   :  { %v1594_v49 = vpop.eup %1593  ;;  %v1418_v16 = vadd.f32 -1.0, %v1592_v62 }
 0x371   :  { %v1596_v22 = vpop.eup %1595  ;;  %v1417_v21 = vadd.f32 -1.0, %v1594_v49 }
 0x372   :  { %v1598_v26 = vpop.eup %1597  ;;  %v1415_v7 = vadd.f32 -1.0, %v1596_v22  ;;  %v1084_v47 = vsel %vm1068_vm7, %v2346_v18, %v1418_v16  ;;  %v1080_v18 = vsel %vm1064_vm9, %v2335_v35, %v1414_v57 }
 0x373   :  { %v1600_v25 = vpop.eup %1599  ;;  %v1419_v50 = vadd.f32 -1.0, %v1598_v26  ;;  %v1083_v4 = vsel %vm1067_vm5, %v2344_v59, %v1417_v21  ;;  %v1092_v41 = vpack.c.bf16 %v1082_v55, %v1080_v18  ;;  %v1078_v59 = vsel %vm1062_vm11, %v2333_v12, %v1412_v46 }
 0x374   :  { %v1602_v54 = vpop.eup %1601  ;;  %v1420_v58 = vadd.f32 -1.0, %v1600_v25  ;;  %v1081_v13 = vsel %vm1065_vm10, %v2341_v0, %v1415_v7 }
 0x375   :  { %v1604_v61 = vpop.eup %1603  ;;  %v1085_v10 = vsel %vm1069_vm6, %v1003_v27, %v1419_v50  ;;  %v1413_v63 = vadd.f32 -1.0, %v1602_v54 }
 0x376   :  { %v1606_v17 = vpop.eup %1605  ;;  %v1086_v32 = vsel %vm1070_vm8, %v1005_v43, %v1420_v58  ;;  %v1410_v53 = vadd.f32 -1.0, %v1604_v61  ;;  %v1093_v51 = vpack.c.bf16 %v1085_v10, %v1083_v4 }
 0x377   :  { %v1608_v15 = vpop.eup %1607  ;;  %v1094_v31 = vpack.c.bf16 %v1086_v32, %v1084_v47  ;;  %v1411_v1 = vadd.f32 -1.0, %v1606_v17  ;;  %v1079_v35 = vsel %vm1063_vm12, %v2348_v42, %v1413_v63  ;;  %vm1247_vm12 = vcmask 261120  }
 0x378   :  { %v1610_v19 = vpop.eup %1609  ;;  %v1408_v52 = vadd.f32 -1.0, %v1608_v15  ;;  %v1091_v0 = vpack.c.bf16 %v1081_v13, %v1079_v35  ;;  %v1076_v6 = vsel %vm1060_vm13, %v2351_v33, %v1410_v53 }
 0x379   :  { %v1612_v39 = vpop.eup %1611  ;;  %1147 = vmatprep.subr.bf16.mxu0 %v1094_v31  ;;  %v1409_v27 = vadd.f32 -1.0, %v1610_v19  ;;  %v1077_v3 = vsel %vm1061_vm14, %v2355_v20, %v1411_v1  ;;  %v1090_v14 = vpack.c.bf16 %v1078_v59, %v1076_v6 }
 0x37a   :  { %v1614_v23 = vpop.eup %1613  ;;  %1148 = vmatpush1.bf16.msra.mxu0 %v1093_v51  ;;  %v1406_v43 = vadd.f32 -1.0, %v1612_v39  ;;  %v1074_v12 = vsel %vm1058_vm15, %v2357_v5, %v1408_v52 }
 0x37b   :  { %1149 = vmatprep.subr.bf16.mxu0 %v1092_v41  ;;  %v1616_v30 = vpop.eup %1615  ;;  %v1407_v38 = vadd.f32 -1.0, %v1614_v23  ;;  %v1075_v2 = vsel %vm1059_vm0, %v2359_v45, %v1409_v27  ;;  %v1487_v45 = vld [vmem:[%s2430_s7] sm:$0xff]  }
 0x37c   :  { %v1405_v42 = vadd.f32 -1.0, %v1616_v30  ;;  %v1089_v33 = vpack.c.bf16 %v1077_v3, %v1075_v2  ;;  %v1072_v34 = vsel %vm1056_vm2, %v2362_v28, %v1406_v43  ;;  %v1488_v28 = vld [vmem:[%s2430_s7 + $0x8] sm:$0xff]  }
 0x37d   :  { %v1073_v56 = vsel %vm1057_vm3, %v2365_v29, %v1407_v38  ;;  %v1088_v20 = vpack.c.bf16 %v1074_v12, %v1072_v34  ;;  %v1116_v29 = vpop.permute.xlu0 %1115  ;;  %v1243_v34 = vlaneseq }
 0x37e   :  { %1150 = vmatpush1.bf16.msra.mxu0 %v1091_v0  ;;  %v1071_v36 = vsel %vm1055_vm4, %v2369_v24, %v1405_v42  ;;  %v1121_v24 = vpop.permute.xlu1 %1120 }
 0x37f   :  { %1151 = vmatprep.subr.bf16.mxu0 %v1090_v14  ;;  %v1087_v5 = vpack.c.bf16 %v1073_v56, %v1071_v36  ;;  %v1244_v56 = vshrl.u32 %v1243_v34, 7  ;;  %vm1312_vm13 = vcmp.lt.s32.totalorder %v1243_v34, 256 }
 0x381   :  { %v1106_v44 = vpop.permute.xlu0 %1105 }
 0x382   :  { %1152 = vmatpush1.bf16.msra.mxu0 %v1089_v33  ;;  %v1111_v11 = vpop.permute.xlu1 %1110  ;;  %v1236_v33 = vld [vmem:[%s2432_s9] sm:$0x1]  ;;  %s1321_s9 = sshll.u32 %s1657_s8, 4  ;;  %s1322_s9 = int_to_ptr.vmem [resolvable:$true] %s1321_s9 }
 0x383   :  { %1153 = vmatprep.subr.bf16.mxu0 %v1088_v20  ;;  %v1656_v20 = vmov 1966171168   ;;  %s1633_s4 = scalar_lea.vmem %s1322_s9, 32  ;;  %p1638_p1 = scmp.lt.s32.totalorder %s1322_s9, %s1322_s9 }
 0x384   :  { %v1296_v36 = vunpack.c.l.s4 %v1656_v20  ;;  %p1634_p0 = scmp.ne.s32.totalorder %s1322_s9, %s1633_s4  ;;  %p1639_p2 = scmp.lt.s32.totalorder %s1633_s4, %s1633_s4 }
 0x386   :  { %1154 = vmatpush1.bf16.msra.mxu0 %v1087_v5  ;;  %v1245_v5 = vsub.s32 0, %v1244_v56  ;;  %p1640_p3 = por %p1639_p2, %p1638_p1 }
 0x388   :  { %p1641_p4 = pnand %p1640_p3, %p1634_p0 }
 0x389   :  { %1423 = vmatmul.mubr.msk.bf16.vlgmr.msra.gmra.mxu0 %vm540_vm1, %v1487_v45  ;;  %v1241_v45 = vpop.permute.xlu0 %1240 }
 0x38a   :  { %1181 = vmatprep.mubr.bf16.mxu0 %v1655_v8 }
 0x391   :  { %1424 = vmatmul.mubr.msk.bf16.gmra.mxu0 %vm540_vm1, %v1488_v28  ;;  %v1297_v28 = vunpack.c.0.s8 %v1296_v36 }
 0x392   :  { %1283 = vmatprep.mubr.bf16.mxu0 %v1655_v8 }
 0x449   :  { %v1173_v37 = vpop.f32.mrf.mxu0 }
 0x44a   :  { %v1174_v54 = vadd.f32 %v1173_v37, %v1106_v44 }
 0x44b   :  { %v1175_v60 = vpop.f32.mrf.mxu0 }
 0x44c   :  { %v1176_v48 = vadd.f32 %v1175_v60, %v1106_v44  ;;  %v1192_v47 = vmul.f32 1.442695, %v1174_v54  ;;  %vm1216_vm11 = vcmp.gt.f32.partialorder %v1174_v54, 0.0 }
 0x44d   :  { %v1177_v40 = vpop.f32.mrf.mxu0 }
 0x44e   :  { %v1194_v26 = vmul.f32 1.442695, %v1176_v48  ;;  %v1178_v16 = vadd.f32 %v1177_v40, %v1111_v11  ;;  %vm1217_vm9 = vcmp.gt.f32.partialorder %v1176_v48, 0.0  ;;  %v1300_v40 = vsub.s32 %v1297_v28, %v1244_v56 }
 0x44f   :  { %v1179_v62 = vpop.f32.mrf.mxu0 }
 0x450   :  { %v1180_v49 = vadd.f32 %v1179_v62, %v1111_v11  ;;  %1617 = vpow2.f32 %v1194_v26  ;;  %v1196_v7 = vmul.f32 1.442695, %v1178_v16  ;;  %vm1218_vm10 = vcmp.gt.f32.partialorder %v1178_v16, 0.0 }
 0x451   :  { %v1183_v22 = vpop.f32.mrf.mxu0 }
 0x452   :  { %v1184_v9 = vadd.f32 %v1183_v22, %v1116_v29  ;;  %v1198_v25 = vmul.f32 1.442695, %v1180_v49  ;;  %vm1219_vm1 = vcmp.gt.f32.partialorder %v1180_v49, 0.0 }
 0x453   :  { %v1185_v21 = vpop.f32.mrf.mxu0 }
 0x454   :  { %v1186_v50 = vadd.f32 %v1185_v21, %v1116_v29  ;;  %v1200_v57 = vmul.f32 1.442695, %v1184_v9  ;;  %1619 = vpow2.f32 %v1198_v25  ;;  %vm1220_vm8 = vcmp.gt.f32.partialorder %v1184_v9, 0.0 }
 0x455   :  { %v1187_v8 = vpop.f32.mrf.mxu0 }
 0x456   :  { %v1202_v58 = vmul.f32 1.442695, %v1186_v50  ;;  %v1188_v61 = vadd.f32 %v1187_v8, %v1121_v24  ;;  %vm1221_vm6 = vcmp.gt.f32.partialorder %v1186_v50, 0.0 }
 0x457   :  { %v1189_v10 = vpop.f32.mrf.mxu0 }
 0x458   :  { %1621 = vpow2.f32 %v1202_v58  ;;  %v1204_v17 = vmul.f32 1.442695, %v1188_v61  ;;  %v1190_v46 = vadd.f32 %v1189_v10, %v1121_v24  ;;  %vm1222_vm5 = vcmp.gt.f32.partialorder %v1188_v61, 0.0 }
 0x459   :  { %1623 = vpow2.f32 %v1200_v57  ;;  %v1246_v24 = vrot.slane %v1241_v45, %v1245_v5 }
 0x45a   :  { %1625 = vpow2.f32 %v1204_v17  ;;  %v1206_v32 = vmul.f32 1.442695, %v1190_v46  ;;  %vm1223_vm7 = vcmp.gt.f32.partialorder %v1190_v46, 0.0 }
 0x45b   :  { %1627 = vpow2.f32 %v1196_v7 }
 0x45c   :  { %1629 = vpow2.f32 %v1206_v32 }
 0x45d   :  { %1631 = vpow2.f32 %v1192_v47  ;;  %v1618_v55 = vpop.eup %1617 }
 0x45e   :  { %v1426_v41 = vadd.f32 -1.0, %v1618_v55 }
 0x460   :  { %v1225_v3 = vsel %vm1217_vm9, %v1176_v48, %v1426_v41 }
 0x461   :  { %v1620_v15 = vpop.eup %1619 }
 0x462   :  { %v1428_v53 = vadd.f32 -1.0, %v1620_v15 }
 0x464   :  { %v1227_v30 = vsel %vm1219_vm1, %v1180_v49, %v1428_v53 }
 0x465   :  { %v1622_v63 = vpop.eup %1621  ;;  %v1233_v12 = vpack.c.bf16 %v1227_v30, %v1225_v3 }
 0x466   :  { %v1624_v4 = vpop.eup %1623  ;;  %v1430_v51 = vadd.f32 -1.0, %v1622_v63 }
 0x467   :  { %v1626_v31 = vpop.eup %1625  ;;  %v1429_v1 = vadd.f32 -1.0, %v1624_v4 }
 0x468   :  { %v1628_v19 = vpop.eup %1627  ;;  %v1431_v18 = vadd.f32 -1.0, %v1626_v31  ;;  %v1229_v27 = vsel %vm1221_vm6, %v1186_v50, %v1430_v51 }
 0x469   :  { %v1630_v39 = vpop.eup %1629  ;;  %v1427_v52 = vadd.f32 -1.0, %v1628_v19  ;;  %v1228_v0 = vsel %vm1220_vm8, %v1184_v9, %v1429_v1 }
 0x46a   :  { %v1632_v13 = vpop.eup %1631  ;;  %v1432_v23 = vadd.f32 -1.0, %v1630_v39  ;;  %v1230_v59 = vsel %vm1222_vm5, %v1188_v61, %v1431_v18 }
 0x46b   :  { %v1425_v43 = vadd.f32 -1.0, %v1632_v13  ;;  %v1234_v38 = vpack.c.bf16 %v1230_v59, %v1228_v0  ;;  %v1226_v14 = vsel %vm1218_vm10, %v1178_v16, %v1427_v52 }
 0x46c   :  { %v1231_v35 = vsel %vm1223_vm7, %v1190_v46, %v1432_v23 }
 0x46d   :  { %v1235_v6 = vpack.c.bf16 %v1231_v35, %v1229_v27  ;;  %v1224_v42 = vsel %vm1216_vm11, %v1174_v54, %v1425_v43 }
 0x46e   :  { %v1232_v2 = vpack.c.bf16 %v1226_v14, %v1224_v42 }
 0x46f   :  { %1263 = vmatprep.subr.bf16.mxu0 %v1235_v6 }
 0x470   :  { %1264 = vmatpush1.bf16.msra.mxu0 %v1234_v38 }
 0x471   :  { %1265 = vmatprep.subr.bf16.mxu0 %v1233_v12 }
 0x474   :  { %1266 = vmatpush1.bf16.msra.mxu0 %v1232_v2 }
 0x477   :  { %1433 = vmatmul.mubr.msk.bf16.vlgmr.msra.gmra.mxu0 %vm1247_vm12, %v1236_v33 }
 0x537   :  { %v1285_v29 = vpop.f32.mrf.mxu0 }
 0x538   :  { %v1286_v60 = vadd.f32 %v1285_v29, %v1246_v24 }
 0x539   :  { %v1287_v37 = vpop.f32.mrf.mxu0 }
 0x53a   :  { %v1288_v44 = vadd.f32 %v1287_v37, %v1246_v24 }
 0x53b   :  { %v1289_v48 = vpop.f32.mrf.mxu0 }
 0x53c   :  { %v1294_v11 = vcombine.low %v1286_v60, %v1288_v44 }
 0x53d   :  { %v1290_v62 = vpop.f32.mrf.mxu0 }
 0x53e   :  { %v1301_v49 = vrot.slane %v1294_v11, %v1300_v40 }
 0x540   :  { %v1308_v22 = vrot.slane %v1301_v49, %v1300_v40 }
 0x542   :  { %1314 = vst.msk [vmem:[#allocation3] sm:$0x3] %vm1312_vm13, %v1308_v22 }
 0x543   :  { %1644 = shalt.err (!%p1641_p4)
}
 0x544   :  { %1324 = dma.vmem_to_hbm [thread:$0]  %s1322_s9, 32, %s2434_s11, [#allocation4]  }
 0x545   :  { %1653 = dma.done.wait [#allocation4], 32  }
 0x546   :  { %1654 = vsyncadd [#allocation4], 4294967264 }
 0x547   :  { %1328 = vsyncpa [#allocation4], 1 }

</bundles_post_ra>
